<compile_context>
chip_gen: v5e
topology: v5e:2x2
jax: 0.10.0
libtpu: 0.0.40
codegen_flags: <defaults>
</compile_context>

<pallas_src>
import jax
import jax.numpy as jnp
from jax.experimental import pallas as pl
from jax.experimental.pallas import tpu as pltpu


def _round_up(n, m):
    return ((n + m - 1) // m) * m


def _pad_rows(a, rows):
    if a.shape[0] == rows:
        return a
    pad = [(0, rows - a.shape[0])] + [(0, 0)] * (a.ndim - 1)
    return jnp.pad(a, pad)


_COMPILER_PARAMS = pltpu.CompilerParams(
    dimension_semantics=("parallel",),      # shard the row axis across TCs (v7x)
    vmem_limit_bytes=32 * 1024 * 1024,      # explicit scoped-VMEM budget w/ headroom
)


# ----------------------------- Pallas kernels ------------------------------

def _conv_pool_kernel(a00_ref, a01_ref, a10_ref, a11_ref, w_ref, shift_ref, o_ref):
    """Fused conv(im2col matmul) + BN(folded) + ReLU + 2x2/stride-2 max-pool.

    a_pq:  (TM, K*K*Cin) bf16 im2col rows for pool offset (p, q)
    w:     (K*K*Cin, Cout) bf16, BN scale pre-folded into columns
    shift: (1, Cout) f32 folded BN shift
    out:   (TM, Cout) bf16 pooled activation (rows ordered (b, hp, wp))
    """
    w = w_ref[...]
    y00 = jnp.dot(a00_ref[...], w, preferred_element_type=jnp.float32)
    y01 = jnp.dot(a01_ref[...], w, preferred_element_type=jnp.float32)
    y10 = jnp.dot(a10_ref[...], w, preferred_element_type=jnp.float32)
    y11 = jnp.dot(a11_ref[...], w, preferred_element_type=jnp.float32)
    y = jnp.maximum(jnp.maximum(y00, y01), jnp.maximum(y10, y11))   # pool
    y = y + shift_ref[...]                                          # BN shift (f32)
    o_ref[...] = jnp.maximum(y, 0.0).astype(o_ref.dtype)            # ReLU


def _fc3_kernel(x_ref, w0_ref, b0_ref, w1_ref, b1_ref, w2_ref, b2_ref, o_ref):
    """Fused fc -> ReLU -> fc1 -> ReLU -> fc2; all weights resident in VMEM."""
    h = jnp.dot(x_ref[...], w0_ref[...], preferred_element_type=jnp.float32)
    h = jnp.maximum(h + b0_ref[...], 0.0).astype(jnp.bfloat16)
    h = jnp.dot(h, w1_ref[...], preferred_element_type=jnp.float32)
    h = jnp.maximum(h + b1_ref[...], 0.0).astype(jnp.bfloat16)
    y = jnp.dot(h, w2_ref[...], preferred_element_type=jnp.float32)
    o_ref[...] = (y + b2_ref[...]).astype(o_ref.dtype)


# ------------------------------- wrappers -----------------------------------

def _im2col_pooled(x_nhwc, k):
    """Four im2col operands, one per 2x2 pool offset; rows ordered (b, hp, wp).

    Patch feature order is (kh, kw, cin), matching the (2,3,1,0) weight reshape.
    """
    B, H, W, C = x_nhwc.shape
    Ho, Wo = H - k + 1, W - k + 1
    Hp, Wp = Ho // 2, Wo // 2
    mats = []
    for p in (0, 1):
        for q in (0, 1):
            cols = [x_nhwc[:, p + i: p + i + 2 * Hp: 2, q + j: q + j + 2 * Wp: 2, :]
                    for i in range(k) for j in range(k)]
            patches = jnp.concatenate(cols, axis=-1)          # (B, Hp, Wp, k*k*C)
            mats.append(patches.reshape(B * Hp * Wp, k * k * C))
    return mats, (B, Hp, Wp)


def conv_bn_relu_pool(x_nhwc, wm, shift):
    """Conv2d(valid, stride 1) + BatchNorm2d(eval, folded) + ReLU + MaxPool2d(2,2)."""
    k = 5
    cout = wm.shape[1]
    mats, (B, Hp, Wp) = _im2col_pooled(x_nhwc, k)
    M = B * Hp * Wp
    kdim = mats[0].shape[1]
    tm = min(512, _round_up(M, 16))          # row tile, bf16-sublane aligned
    m_pad = _round_up(M, tm)
    mats = [_pad_rows(m.astype(jnp.bfloat16), m_pad) for m in mats]

    a_spec = pl.BlockSpec((tm, kdim), lambda i: (i, 0))
    out = pl.pallas_call(
        _conv_pool_kernel,
        out_shape=jax.ShapeDtypeStruct((m_pad, cout), jnp.bfloat16),
        grid_spec=pltpu.PrefetchScalarGridSpec(
            num_scalar_prefetch=0,
            grid=(m_pad // tm,),
            in_specs=[a_spec, a_spec, a_spec, a_spec,
                      pl.BlockSpec((kdim, cout), lambda i: (0, 0)),
                      pl.BlockSpec((1, cout), lambda i: (0, 0))],
            out_specs=pl.BlockSpec((tm, cout), lambda i: (i, 0)),
        ),
        compiler_params=_COMPILER_PARAMS,
    )(*mats, wm, shift)
    return out[:M].reshape(B, Hp, Wp, cout)


def fc3(x, w0, b0, w1, b1, w2, b2):
    """Fused Linear(400,120)+ReLU -> Linear(120,84)+ReLU -> Linear(84,nc)."""
    B, D = x.shape
    nc = w2.shape[1]
    tb = min(512, _round_up(B, 16))
    b_pad = _round_up(B, tb)
    xp = _pad_rows(x.astype(jnp.bfloat16), b_pad)
    out = pl.pallas_call(
        _fc3_kernel,
        out_shape=jax.ShapeDtypeStruct((b_pad, nc), jnp.float32),
        grid_spec=pltpu.PrefetchScalarGridSpec(
            num_scalar_prefetch=0,
            grid=(b_pad // tb,),
            in_specs=[pl.BlockSpec((tb, D), lambda i: (i, 0)),
                      pl.BlockSpec(w0.shape, lambda i: (0, 0)),
                      pl.BlockSpec(b0.shape, lambda i: (0, 0)),
                      pl.BlockSpec(w1.shape, lambda i: (0, 0)),
                      pl.BlockSpec(b1.shape, lambda i: (0, 0)),
                      pl.BlockSpec(w2.shape, lambda i: (0, 0)),
                      pl.BlockSpec(b2.shape, lambda i: (0, 0))],
            out_specs=pl.BlockSpec((tb, nc), lambda i: (i, 0)),
        ),
        compiler_params=_COMPILER_PARAMS,
    )(xp, w0, b0, w1, b1, w2, b2)
    return out[:B]


# ------------------------------ parameters -----------------------------------

def init_params(key, num_classes=10):
    ks = jax.random.split(key, 14)
    p = {}
    # layer1: Conv2d(3, 6, 5) + BatchNorm2d(6)
    p["w1"] = 0.1 * jax.random.normal(ks[0], (6, 3, 5, 5), jnp.float32)
    p["b1"] = 0.1 * jax.random.normal(ks[1], (6,), jnp.float32)
    p["g1"] = 1.0 + 0.1 * jax.random.normal(ks[2], (6,), jnp.float32)
    p["beta1"] = 0.1 * jax.random.normal(ks[3], (6,), jnp.float32)
    p["m1"] = jnp.zeros((6,), jnp.float32)
    p["v1"] = jnp.ones((6,), jnp.float32)
    # layer2: Conv2d(6, 16, 5) + BatchNorm2d(16)
    p["w2"] = 0.1 * jax.random.normal(ks[4], (16, 6, 5, 5), jnp.float32)
    p["b2"] = 0.1 * jax.random.normal(ks[5], (16,), jnp.float32)
    p["g2"] = 1.0 + 0.1 * jax.random.normal(ks[6], (16,), jnp.float32)
    p["beta2"] = 0.1 * jax.random.normal(ks[7], (16,), jnp.float32)
    p["m2"] = jnp.zeros((16,), jnp.float32)
    p["v2"] = jnp.ones((16,), jnp.float32)
    # fc: Linear(400, 120), fc1: Linear(120, 84), fc2: Linear(84, num_classes)
    p["wfc"] = 0.05 * jax.random.normal(ks[8], (120, 400), jnp.float32)
    p["bfc"] = 0.05 * jax.random.normal(ks[9], (120,), jnp.float32)
    p["wfc1"] = 0.05 * jax.random.normal(ks[10], (84, 120), jnp.float32)
    p["bfc1"] = 0.05 * jax.random.normal(ks[11], (84,), jnp.float32)
    p["wfc2"] = 0.05 * jax.random.normal(ks[12], (num_classes, 84), jnp.float32)
    p["bfc2"] = 0.05 * jax.random.normal(ks[13], (num_classes,), jnp.float32)
    return p


def prepare_params(p, eps=1e-5):
    """One-time prep: fold BN into conv weights, reshape/transpose/permute FC
    weights, cast MXU operands to bf16 (biases/shifts stay f32)."""
    prep = {}
    for idx in (1, 2):
        w, b = p[f"w{idx}"], p[f"b{idx}"]
        gamma, beta = p[f"g{idx}"], p[f"beta{idx}"]
        mean, var = p[f"m{idx}"], p[f"v{idx}"]
        cout, cin, k, _ = w.shape
        inv_std = 1.0 / jnp.sqrt(var + eps)
        scale = gamma * inv_std                                     # (Cout,)
        wm = jnp.transpose(w, (2, 3, 1, 0)).reshape(k * k * cin, cout)  # (kh,kw,cin)xCout
        prep[f"wm{idx}"] = (wm * scale[None, :]).astype(jnp.bfloat16)
        prep[f"shift{idx}"] = ((b - mean) * scale + beta).reshape(1, cout).astype(jnp.float32)
    # Permute fc weight columns from PyTorch NCHW-flat order (c*25 + h*5 + w)
    # to NHWC-flat order ((h*5 + w)*16 + c) so conv2's output flattens directly.
    hp, wp, c2 = 5, 5, 16
    hw = jnp.arange(hp * wp)
    perm = (jnp.arange(c2)[None, :] * (hp * wp) + hw[:, None]).reshape(-1)   # (400,)
    prep["wfc_t"] = p["wfc"][:, perm].T.astype(jnp.bfloat16)    # (400, 120)
    prep["bfc"] = p["bfc"].reshape(1, -1).astype(jnp.float32)
    prep["wfc1_t"] = p["wfc1"].T.astype(jnp.bfloat16)           # (120, 84)
    prep["bfc1"] = p["bfc1"].reshape(1, -1).astype(jnp.float32)
    prep["wfc2_t"] = p["wfc2"].T.astype(jnp.bfloat16)           # (84, num_classes)
    prep["bfc2"] = p["bfc2"].reshape(1, -1).astype(jnp.float32)
    return prep


# -------------------------------- forward ------------------------------------

def lenet5_forward(prep, x_nchw):
    # x: (B, 3, 32, 32) NCHW, exactly as the PyTorch module expects.
    x = jnp.transpose(x_nchw, (0, 2, 3, 1)).astype(jnp.bfloat16)       # NCHW -> NHWC
    out = conv_bn_relu_pool(x, prep["wm1"], prep["shift1"])            # (B, 14, 14, 6)
    out = conv_bn_relu_pool(out, prep["wm2"], prep["shift2"])          # (B, 5, 5, 16)
    B = out.shape[0]
    flat = out.reshape(B, -1)    # NHWC-flat; fc weight columns pre-permuted to match
    return fc3(flat, prep["wfc_t"], prep["bfc"],
               prep["wfc1_t"], prep["bfc1"],
               prep["wfc2_t"], prep["bfc2"])                           # (B, num_classes)


if __name__ == "__main__":
    key = jax.random.PRNGKey(0)
    pkey, xkey = jax.random.split(key)
    params = init_params(pkey, num_classes=10)
    prep = prepare_params(params)
    # LeNet5's fc layer requires 16*5*5 = 400 features, which implies 32x32 input.
    x = jax.random.normal(xkey, (2, 3, 32, 32), jnp.float32)
    fwd = jax.jit(lenet5_forward)
    y = fwd(prep, x)
    jax.block_until_ready(y)
    assert y.shape == (2, 10) and y.dtype == jnp.float32
    print("KERNEL_OK")
</pallas_src>

<mosaic_0001>
module attributes {stable_mosaic.version = 11 : i64} {
  func.func @_conv_pool_kernel(%arg0: i32, %arg1: memref<400x75xbf16, #tpu.memory_space<vmem>>, %arg2: memref<400x75xbf16, #tpu.memory_space<vmem>>, %arg3: memref<400x75xbf16, #tpu.memory_space<vmem>>, %arg4: memref<400x75xbf16, #tpu.memory_space<vmem>>, %arg5: memref<75x6xbf16, #tpu.memory_space<vmem>>, %arg6: memref<1x6xf32, #tpu.memory_space<vmem>>, %arg7: memref<400x6xbf16, #tpu.memory_space<vmem>>) attributes {dimension_semantics = [#tpu.dimension_semantics<parallel>], iteration_bounds = array<i64: 1>, scalar_prefetch = 0 : i64, scratch_operands = 0 : i64, tpu.core_type = #tpu.core_type<tc>, window_params = [{transform_indices = @transform_0, window_bounds = array<i64: 400, 75>}, {transform_indices = @transform_1, window_bounds = array<i64: 400, 75>}, {transform_indices = @transform_2, window_bounds = array<i64: 400, 75>}, {transform_indices = @transform_3, window_bounds = array<i64: 400, 75>}, {pipeline_mode = #tpu.pipeline_mode<synchronous>, transform_indices = @transform_4, window_bounds = array<i64: 75, 6>}, {pipeline_mode = #tpu.pipeline_mode<synchronous>, transform_indices = @transform_5, window_bounds = array<i64: 1, 6>}, {transform_indices = @transform_6, window_bounds = array<i64: 400, 6>}]} {
    %c0 = arith.constant 0 : index
    %c0_0 = arith.constant 0 : index
    %0 = vector.load %arg5[%c0, %c0_0] : memref<75x6xbf16, #tpu.memory_space<vmem>>, vector<75x6xbf16>
    %c0_1 = arith.constant 0 : index
    %c0_2 = arith.constant 0 : index
    %1 = vector.load %arg1[%c0_1, %c0_2] : memref<400x75xbf16, #tpu.memory_space<vmem>>, vector<400x75xbf16>
    %cst = arith.constant dense<0.000000e+00> : vector<400x6xf32>
    %2 = tpu.matmul %1, %0, %cst {dimension_numbers = #tpu.dot_dimension_numbers<[1], [0], [0], [1], [0, 0, 1, 1], [], []>} : vector<400x75xbf16>, vector<75x6xbf16>, vector<400x6xf32> -> vector<400x6xf32>
    %c0_3 = arith.constant 0 : index
    %c0_4 = arith.constant 0 : index
    %3 = vector.load %arg2[%c0_3, %c0_4] : memref<400x75xbf16, #tpu.memory_space<vmem>>, vector<400x75xbf16>
    %cst_5 = arith.constant dense<0.000000e+00> : vector<400x6xf32>
    %4 = tpu.matmul %3, %0, %cst_5 {dimension_numbers = #tpu.dot_dimension_numbers<[1], [0], [0], [1], [0, 0, 1, 1], [], []>} : vector<400x75xbf16>, vector<75x6xbf16>, vector<400x6xf32> -> vector<400x6xf32>
    %c0_6 = arith.constant 0 : index
    %c0_7 = arith.constant 0 : index
    %5 = vector.load %arg3[%c0_6, %c0_7] : memref<400x75xbf16, #tpu.memory_space<vmem>>, vector<400x75xbf16>
    %cst_8 = arith.constant dense<0.000000e+00> : vector<400x6xf32>
    %6 = tpu.matmul %5, %0, %cst_8 {dimension_numbers = #tpu.dot_dimension_numbers<[1], [0], [0], [1], [0, 0, 1, 1], [], []>} : vector<400x75xbf16>, vector<75x6xbf16>, vector<400x6xf32> -> vector<400x6xf32>
    %c0_9 = arith.constant 0 : index
    %c0_10 = arith.constant 0 : index
    %7 = vector.load %arg4[%c0_9, %c0_10] : memref<400x75xbf16, #tpu.memory_space<vmem>>, vector<400x75xbf16>
    %cst_11 = arith.constant dense<0.000000e+00> : vector<400x6xf32>
    %8 = tpu.matmul %7, %0, %cst_11 {dimension_numbers = #tpu.dot_dimension_numbers<[1], [0], [0], [1], [0, 0, 1, 1], [], []>} : vector<400x75xbf16>, vector<75x6xbf16>, vector<400x6xf32> -> vector<400x6xf32>
    %9 = arith.maximumf %2, %4 : vector<400x6xf32>
    %10 = arith.maximumf %6, %8 : vector<400x6xf32>
    %11 = arith.maximumf %9, %10 : vector<400x6xf32>
    %c0_12 = arith.constant 0 : index
    %c0_13 = arith.constant 0 : index
    %12 = vector.load %arg6[%c0_12, %c0_13] : memref<1x6xf32, #tpu.memory_space<vmem>>, vector<1x6xf32>
    %13 = vector.broadcast %12 : vector<1x6xf32> to vector<400x6xf32>
    %14 = arith.addf %11, %13 : vector<400x6xf32>
    %cst_14 = arith.constant 0.000000e+00 : f32
    %15 = vector.broadcast %cst_14 : f32 to vector<400x6xf32>
    %16 = arith.maximumf %14, %15 : vector<400x6xf32>
    %17 = arith.truncf %16 : vector<400x6xf32> to vector<400x6xbf16>
    %c0_15 = arith.constant 0 : index
    %c0_16 = arith.constant 0 : index
    %18 = vector.load %arg7[%c0_15, %c0_16] : memref<400x6xbf16, #tpu.memory_space<vmem>>, vector<400x6xbf16>
    tpu.vector_store %arg7[%c0_15, %c0_16], %17 {strides = array<i32>} : memref<400x6xbf16, #tpu.memory_space<vmem>>, vector<400x6xbf16>,
    return
  }
  func.func @transform_0(%arg0: i32) -> (i32, i32) {
    %c0_i32 = arith.constant 0 : i32
    %c0_i32_0 = arith.constant 0 : i32
    return %arg0, %c0_i32 : i32, i32
  }
  func.func @transform_1(%arg0: i32) -> (i32, i32) {
    %c0_i32 = arith.constant 0 : i32
    %c0_i32_0 = arith.constant 0 : i32
    return %arg0, %c0_i32 : i32, i32
  }
  func.func @transform_2(%arg0: i32) -> (i32, i32) {
    %c0_i32 = arith.constant 0 : i32
    %c0_i32_0 = arith.constant 0 : i32
    return %arg0, %c0_i32 : i32, i32
  }
  func.func @transform_3(%arg0: i32) -> (i32, i32) {
    %c0_i32 = arith.constant 0 : i32
    %c0_i32_0 = arith.constant 0 : i32
    return %arg0, %c0_i32 : i32, i32
  }
  func.func @transform_4(%arg0: i32) -> (i32, i32) {
    %c0_i32 = arith.constant 0 : i32
    %c0_i32_0 = arith.constant 0 : i32
    %c0_i32_1 = arith.constant 0 : i32
    return %c0_i32, %c0_i32_0 : i32, i32
  }
  func.func @transform_5(%arg0: i32) -> (i32, i32) {
    %c0_i32 = arith.constant 0 : i32
    %c0_i32_0 = arith.constant 0 : i32
    %c0_i32_1 = arith.constant 0 : i32
    return %c0_i32, %c0_i32_0 : i32, i32
  }
  func.func @transform_6(%arg0: i32) -> (i32, i32) {
    %c0_i32 = arith.constant 0 : i32
    %c0_i32_0 = arith.constant 0 : i32
    return %arg0, %c0_i32 : i32, i32
  }
}

module attributes {stable_mosaic.version = 11 : i64} {
  func.func @_conv_pool_kernel(%arg0: i32, %arg1: memref<64x150xbf16, #tpu.memory_space<vmem>>, %arg2: memref<64x150xbf16, #tpu.memory_space<vmem>>, %arg3: memref<64x150xbf16, #tpu.memory_space<vmem>>, %arg4: memref<64x150xbf16, #tpu.memory_space<vmem>>, %arg5: memref<150x16xbf16, #tpu.memory_space<vmem>>, %arg6: memref<1x16xf32, #tpu.memory_space<vmem>>, %arg7: memref<64x16xbf16, #tpu.memory_space<vmem>>) attributes {dimension_semantics = [#tpu.dimension_semantics<parallel>], iteration_bounds = array<i64: 1>, scalar_prefetch = 0 : i64, scratch_operands = 0 : i64, tpu.core_type = #tpu.core_type<tc>, window_params = [{transform_indices = @transform_0, window_bounds = array<i64: 64, 150>}, {transform_indices = @transform_1, window_bounds = array<i64: 64, 150>}, {transform_indices = @transform_2, window_bounds = array<i64: 64, 150>}, {transform_indices = @transform_3, window_bounds = array<i64: 64, 150>}, {pipeline_mode = #tpu.pipeline_mode<synchronous>, transform_indices = @transform_4, window_bounds = array<i64: 150, 16>}, {pipeline_mode = #tpu.pipeline_mode<synchronous>, transform_indices = @transform_5, window_bounds = array<i64: 1, 16>}, {transform_indices = @transform_6, window_bounds = array<i64: 64, 16>}]} {
    %c0 = arith.constant 0 : index
    %c0_0 = arith.constant 0 : index
    %0 = vector.load %arg5[%c0, %c0_0] : memref<150x16xbf16, #tpu.memory_space<vmem>>, vector<150x16xbf16>
    %c0_1 = arith.constant 0 : index
    %c0_2 = arith.constant 0 : index
    %1 = vector.load %arg1[%c0_1, %c0_2] : memref<64x150xbf16, #tpu.memory_space<vmem>>, vector<64x150xbf16>
    %cst = arith.constant dense<0.000000e+00> : vector<64x16xf32>
    %2 = tpu.matmul %1, %0, %cst {dimension_numbers = #tpu.dot_dimension_numbers<[1], [0], [0], [1], [0, 0, 1, 1], [], []>} : vector<64x150xbf16>, vector<150x16xbf16>, vector<64x16xf32> -> vector<64x16xf32>
    %c0_3 = arith.constant 0 : index
    %c0_4 = arith.constant 0 : index
    %3 = vector.load %arg2[%c0_3, %c0_4] : memref<64x150xbf16, #tpu.memory_space<vmem>>, vector<64x150xbf16>
    %cst_5 = arith.constant dense<0.000000e+00> : vector<64x16xf32>
    %4 = tpu.matmul %3, %0, %cst_5 {dimension_numbers = #tpu.dot_dimension_numbers<[1], [0], [0], [1], [0, 0, 1, 1], [], []>} : vector<64x150xbf16>, vector<150x16xbf16>, vector<64x16xf32> -> vector<64x16xf32>
    %c0_6 = arith.constant 0 : index
    %c0_7 = arith.constant 0 : index
    %5 = vector.load %arg3[%c0_6, %c0_7] : memref<64x150xbf16, #tpu.memory_space<vmem>>, vector<64x150xbf16>
    %cst_8 = arith.constant dense<0.000000e+00> : vector<64x16xf32>
    %6 = tpu.matmul %5, %0, %cst_8 {dimension_numbers = #tpu.dot_dimension_numbers<[1], [0], [0], [1], [0, 0, 1, 1], [], []>} : vector<64x150xbf16>, vector<150x16xbf16>, vector<64x16xf32> -> vector<64x16xf32>
    %c0_9 = arith.constant 0 : index
    %c0_10 = arith.constant 0 : index
    %7 = vector.load %arg4[%c0_9, %c0_10] : memref<64x150xbf16, #tpu.memory_space<vmem>>, vector<64x150xbf16>
    %cst_11 = arith.constant dense<0.000000e+00> : vector<64x16xf32>
    %8 = tpu.matmul %7, %0, %cst_11 {dimension_numbers = #tpu.dot_dimension_numbers<[1], [0], [0], [1], [0, 0, 1, 1], [], []>} : vector<64x150xbf16>, vector<150x16xbf16>, vector<64x16xf32> -> vector<64x16xf32>
    %9 = arith.maximumf %2, %4 : vector<64x16xf32>
    %10 = arith.maximumf %6, %8 : vector<64x16xf32>
    %11 = arith.maximumf %9, %10 : vector<64x16xf32>
    %c0_12 = arith.constant 0 : index
    %c0_13 = arith.constant 0 : index
    %12 = vector.load %arg6[%c0_12, %c0_13] : memref<1x16xf32, #tpu.memory_space<vmem>>, vector<1x16xf32>
    %13 = vector.broadcast %12 : vector<1x16xf32> to vector<64x16xf32>
    %14 = arith.addf %11, %13 : vector<64x16xf32>
    %cst_14 = arith.constant 0.000000e+00 : f32
    %15 = vector.broadcast %cst_14 : f32 to vector<64x16xf32>
    %16 = arith.maximumf %14, %15 : vector<64x16xf32>
    %17 = arith.truncf %16 : vector<64x16xf32> to vector<64x16xbf16>
    %c0_15 = arith.constant 0 : index
    %c0_16 = arith.constant 0 : index
    %18 = vector.load %arg7[%c0_15, %c0_16] : memref<64x16xbf16, #tpu.memory_space<vmem>>, vector<64x16xbf16>
    tpu.vector_store %arg7[%c0_15, %c0_16], %17 {strides = array<i32>} : memref<64x16xbf16, #tpu.memory_space<vmem>>, vector<64x16xbf16>,
    return
  }
  func.func @transform_0(%arg0: i32) -> (i32, i32) {
    %c0_i32 = arith.constant 0 : i32
    %c0_i32_0 = arith.constant 0 : i32
    return %arg0, %c0_i32 : i32, i32
  }
  func.func @transform_1(%arg0: i32) -> (i32, i32) {
    %c0_i32 = arith.constant 0 : i32
    %c0_i32_0 = arith.constant 0 : i32
    return %arg0, %c0_i32 : i32, i32
  }
  func.func @transform_2(%arg0: i32) -> (i32, i32) {
    %c0_i32 = arith.constant 0 : i32
    %c0_i32_0 = arith.constant 0 : i32
    return %arg0, %c0_i32 : i32, i32
  }
  func.func @transform_3(%arg0: i32) -> (i32, i32) {
    %c0_i32 = arith.constant 0 : i32
    %c0_i32_0 = arith.constant 0 : i32
    return %arg0, %c0_i32 : i32, i32
  }
  func.func @transform_4(%arg0: i32) -> (i32, i32) {
    %c0_i32 = arith.constant 0 : i32
    %c0_i32_0 = arith.constant 0 : i32
    %c0_i32_1 = arith.constant 0 : i32
    return %c0_i32, %c0_i32_0 : i32, i32
  }
  func.func @transform_5(%arg0: i32) -> (i32, i32) {
    %c0_i32 = arith.constant 0 : i32
    %c0_i32_0 = arith.constant 0 : i32
    %c0_i32_1 = arith.constant 0 : i32
    return %c0_i32, %c0_i32_0 : i32, i32
  }
  func.func @transform_6(%arg0: i32) -> (i32, i32) {
    %c0_i32 = arith.constant 0 : i32
    %c0_i32_0 = arith.constant 0 : i32
    return %arg0, %c0_i32 : i32, i32
  }
}

module attributes {stable_mosaic.version = 11 : i64} {
  func.func @_fc3_kernel(%arg0: i32, %arg1: memref<16x400xbf16, #tpu.memory_space<vmem>>, %arg2: memref<400x120xbf16, #tpu.memory_space<vmem>>, %arg3: memref<1x120xf32, #tpu.memory_space<vmem>>, %arg4: memref<120x84xbf16, #tpu.memory_space<vmem>>, %arg5: memref<1x84xf32, #tpu.memory_space<vmem>>, %arg6: memref<84x10xbf16, #tpu.memory_space<vmem>>, %arg7: memref<1x10xf32, #tpu.memory_space<vmem>>, %arg8: memref<16x10xf32, #tpu.memory_space<vmem>>) attributes {dimension_semantics = [#tpu.dimension_semantics<parallel>], iteration_bounds = array<i64: 1>, scalar_prefetch = 0 : i64, scratch_operands = 0 : i64, tpu.core_type = #tpu.core_type<tc>, window_params = [{transform_indices = @transform_0, window_bounds = array<i64: 16, 400>}, {pipeline_mode = #tpu.pipeline_mode<synchronous>, transform_indices = @transform_1, window_bounds = array<i64: 400, 120>}, {pipeline_mode = #tpu.pipeline_mode<synchronous>, transform_indices = @transform_2, window_bounds = array<i64: 1, 120>}, {pipeline_mode = #tpu.pipeline_mode<synchronous>, transform_indices = @transform_3, window_bounds = array<i64: 120, 84>}, {pipeline_mode = #tpu.pipeline_mode<synchronous>, transform_indices = @transform_4, window_bounds = array<i64: 1, 84>}, {pipeline_mode = #tpu.pipeline_mode<synchronous>, transform_indices = @transform_5, window_bounds = array<i64: 84, 10>}, {pipeline_mode = #tpu.pipeline_mode<synchronous>, transform_indices = @transform_6, window_bounds = array<i64: 1, 10>}, {transform_indices = @transform_7, window_bounds = array<i64: 16, 10>}]} {
    %c0 = arith.constant 0 : index
    %c0_0 = arith.constant 0 : index
    %0 = vector.load %arg1[%c0, %c0_0] : memref<16x400xbf16, #tpu.memory_space<vmem>>, vector<16x400xbf16>
    %c0_1 = arith.constant 0 : index
    %c0_2 = arith.constant 0 : index
    %1 = vector.load %arg2[%c0_1, %c0_2] : memref<400x120xbf16, #tpu.memory_space<vmem>>, vector<400x120xbf16>
    %cst = arith.constant dense<0.000000e+00> : vector<16x120xf32>
    %2 = tpu.matmul %0, %1, %cst {dimension_numbers = #tpu.dot_dimension_numbers<[1], [0], [0], [1], [0, 0, 1, 1], [], []>} : vector<16x400xbf16>, vector<400x120xbf16>, vector<16x120xf32> -> vector<16x120xf32>
    %c0_3 = arith.constant 0 : index
    %c0_4 = arith.constant 0 : index
    %3 = vector.load %arg3[%c0_3, %c0_4] : memref<1x120xf32, #tpu.memory_space<vmem>>, vector<1x120xf32>
    %4 = vector.broadcast %3 : vector<1x120xf32> to vector<16x120xf32>
    %5 = arith.addf %2, %4 : vector<16x120xf32>
    %cst_5 = arith.constant 0.000000e+00 : f32
    %6 = vector.broadcast %cst_5 : f32 to vector<16x120xf32>
    %7 = arith.maximumf %5, %6 : vector<16x120xf32>
    %8 = arith.truncf %7 : vector<16x120xf32> to vector<16x120xbf16>
    %c0_6 = arith.constant 0 : index
    %c0_7 = arith.constant 0 : index
    %9 = vector.load %arg4[%c0_6, %c0_7] : memref<120x84xbf16, #tpu.memory_space<vmem>>, vector<120x84xbf16>
    %cst_8 = arith.constant dense<0.000000e+00> : vector<16x84xf32>
    %10 = tpu.matmul %8, %9, %cst_8 {dimension_numbers = #tpu.dot_dimension_numbers<[1], [0], [0], [1], [0, 0, 1, 1], [], []>} : vector<16x120xbf16>, vector<120x84xbf16>, vector<16x84xf32> -> vector<16x84xf32>
    %c0_9 = arith.constant 0 : index
    %c0_10 = arith.constant 0 : index
    %11 = vector.load %arg5[%c0_9, %c0_10] : memref<1x84xf32, #tpu.memory_space<vmem>>, vector<1x84xf32>
    %12 = vector.broadcast %11 : vector<1x84xf32> to vector<16x84xf32>
    %13 = arith.addf %10, %12 : vector<16x84xf32>
    %cst_11 = arith.constant 0.000000e+00 : f32
    %14 = vector.broadcast %cst_11 : f32 to vector<16x84xf32>
    %15 = arith.maximumf %13, %14 : vector<16x84xf32>
    %16 = arith.truncf %15 : vector<16x84xf32> to vector<16x84xbf16>
    %c0_12 = arith.constant 0 : index
    %c0_13 = arith.constant 0 : index
    %17 = vector.load %arg6[%c0_12, %c0_13] : memref<84x10xbf16, #tpu.memory_space<vmem>>, vector<84x10xbf16>
    %cst_14 = arith.constant dense<0.000000e+00> : vector<16x10xf32>
    %18 = tpu.matmul %16, %17, %cst_14 {dimension_numbers = #tpu.dot_dimension_numbers<[1], [0], [0], [1], [0, 0, 1, 1], [], []>} : vector<16x84xbf16>, vector<84x10xbf16>, vector<16x10xf32> -> vector<16x10xf32>
    %c0_15 = arith.constant 0 : index
    %c0_16 = arith.constant 0 : index
    %19 = vector.load %arg7[%c0_15, %c0_16] : memref<1x10xf32, #tpu.memory_space<vmem>>, vector<1x10xf32>
    %20 = vector.broadcast %19 : vector<1x10xf32> to vector<16x10xf32>
    %21 = arith.addf %18, %20 : vector<16x10xf32>
    %c0_17 = arith.constant 0 : index
    %c0_18 = arith.constant 0 : index
    %22 = vector.load %arg8[%c0_17, %c0_18] : memref<16x10xf32, #tpu.memory_space<vmem>>, vector<16x10xf32>
    tpu.vector_store %arg8[%c0_17, %c0_18], %21 {strides = array<i32>} : memref<16x10xf32, #tpu.memory_space<vmem>>, vector<16x10xf32>,
    return
  }
  func.func @transform_0(%arg0: i32) -> (i32, i32) {
    %c0_i32 = arith.constant 0 : i32
    %c0_i32_0 = arith.constant 0 : i32
    return %arg0, %c0_i32 : i32, i32
  }
  func.func @transform_1(%arg0: i32) -> (i32, i32) {
    %c0_i32 = arith.constant 0 : i32
    %c0_i32_0 = arith.constant 0 : i32
    %c0_i32_1 = arith.constant 0 : i32
    return %c0_i32, %c0_i32_0 : i32, i32
  }
  func.func @transform_2(%arg0: i32) -> (i32, i32) {
    %c0_i32 = arith.constant 0 : i32
    %c0_i32_0 = arith.constant 0 : i32
    %c0_i32_1 = arith.constant 0 : i32
    return %c0_i32, %c0_i32_0 : i32, i32
  }
  func.func @transform_3(%arg0: i32) -> (i32, i32) {
    %c0_i32 = arith.constant 0 : i32
    %c0_i32_0 = arith.constant 0 : i32
    %c0_i32_1 = arith.constant 0 : i32
    return %c0_i32, %c0_i32_0 : i32, i32
  }
  func.func @transform_4(%arg0: i32) -> (i32, i32) {
    %c0_i32 = arith.constant 0 : i32
    %c0_i32_0 = arith.constant 0 : i32
    %c0_i32_1 = arith.constant 0 : i32
    return %c0_i32, %c0_i32_0 : i32, i32
  }
  func.func @transform_5(%arg0: i32) -> (i32, i32) {
    %c0_i32 = arith.constant 0 : i32
    %c0_i32_0 = arith.constant 0 : i32
    %c0_i32_1 = arith.constant 0 : i32
    return %c0_i32, %c0_i32_0 : i32, i32
  }
  func.func @transform_6(%arg0: i32) -> (i32, i32) {
    %c0_i32 = arith.constant 0 : i32
    %c0_i32_0 = arith.constant 0 : i32
    %c0_i32_1 = arith.constant 0 : i32
    return %c0_i32, %c0_i32_0 : i32, i32
  }
  func.func @transform_7(%arg0: i32) -> (i32, i32) {
    %c0_i32 = arith.constant 0 : i32
    %c0_i32_0 = arith.constant 0 : i32
    return %arg0, %c0_i32 : i32, i32
  }
}

</mosaic_0001>

<bundles_post_ra>
// kernel: lenet5_forward.3
= control target key start
LH: loop header
LB: loop body
LE: loop exit
PB: predicated region body
PF: predicated region fallthrough
CT: control target
= control target key end

     0   :  { %vm314_vm0 = vcmask 1044480   ;;  %vm315_vm1 = vcmask 1045504   ;;  %v2594_v2 = vmov 65535   ;;  %vm238_vm2 = vcmask 613376   ;;  %s3308_s4 = inlined_call_operand.vmem [shape: bf16[75,6], index: 4, kind: input, shape index: {}]   ;;  %s3309_s0 = inlined_call_operand.vmem [shape: bf16[400,75], index: 0, kind: input, shape index: {}]   ;;  %s3310_s1 = inlined_call_operand.vmem [shape: bf16[400,75], index: 1, kind: input, shape index: {}]   ;;  %s3311_s2 = inlined_call_operand.vmem [shape: bf16[400,75], index: 2, kind: input, shape index: {}]   ;;  %s3312_s3 = inlined_call_operand.vmem [shape: bf16[400,75], index: 3, kind: input, shape index: {}]   ;;  %s3313_s5 = inlined_call_operand.vmem [shape: f32[1,6], index: 5, kind: input, shape index: {}]   ;;  %s3314_s6 = inlined_call_operand.vmem [shape: bf16[400,6], index: 6, kind: output, shape index: {}]  }
   0x1   :  { %v2084_v0 = vld [vmem:[%s3308_s4 + $0x20] sm:$0xf]  ;;  %v2490_v1 = vld [vmem:[%s3308_s4 + $0x20] sm:$0x30]  ;;  %v316_v3 = vsel %vm314_vm0, 4294967295, %v2594_v2  ;;  %v2489_v7 = vld [vmem:[%s3308_s4 + $0x18] sm:$0xff] }
   0x2   :  { %v2085_v4 = vor.u32 %v2490_v1, %v2084_v0  ;;  %v317_v5 = vsel %vm315_vm1, %v316_v3, 0  ;;  %v2488_v8 = vld [vmem:[%s3308_s4 + $0x10] sm:$0xff]  ;;  %v2487_v9 = vld [vmem:[%s3308_s4 + $0x8] sm:$0xff]  ;;  %v2486_v10 = vld [vmem:[%s3308_s4] sm:$0xff]  ;;  %vm1911_vm3 = vcmask 44032  }
   0x3   :  { %v2491_v11 = vld [vmem:[%s3309_s0] sm:$0xff]  ;;  %v2492_v15 = vld [vmem:[%s3309_s0 + $0x8] sm:$0xff]  ;;  %v2493_v19 = vld [vmem:[%s3309_s0 + $0x10] sm:$0xff] }
   0x4   :  { %v319_v6 = vand.u32 %v2085_v4, %v317_v5  ;;  %v2516_v12 = vld [vmem:[%s3310_s1] sm:$0xff]  ;;  %v2517_v16 = vld [vmem:[%s3310_s1 + $0x8] sm:$0xff]  ;;  %v2518_v20 = vld [vmem:[%s3310_s1 + $0x10] sm:$0xff] }
   0x5   :  { %v2541_v13 = vld [vmem:[%s3311_s2] sm:$0xff]  ;;  %v2542_v17 = vld [vmem:[%s3311_s2 + $0x8] sm:$0xff]  ;;  %v2543_v21 = vld [vmem:[%s3311_s2 + $0x10] sm:$0xff] }
   0x6   :  { %324 = vmatpush.bf16.msra.mxu0 %v319_v6  ;;  %708 = vmatpush.bf16.msra.mxu1 %v319_v6  ;;  %v2566_v14 = vld [vmem:[%s3312_s3] sm:$0xff]  ;;  %v2567_v18 = vld [vmem:[%s3312_s3 + $0x8] sm:$0xff]  ;;  %v2568_v22 = vld [vmem:[%s3312_s3 + $0x10] sm:$0xff] }
   0x7   :  { %1092 = vmatpush.bf16.msra.mxu2 %v319_v6  ;;  %1476 = vmatpush.bf16.msra.mxu3 %v319_v6  ;;  %v2494_v23 = vld [vmem:[%s3309_s0 + $0x18] sm:$0xff]  ;;  %v2495_v27 = vld [vmem:[%s3309_s0 + $0x20] sm:$0xff]  ;;  %v2496_v31 = vld [vmem:[%s3309_s0 + $0x28] sm:$0xff] }
   0x8   :  { %v2519_v24 = vld [vmem:[%s3310_s1 + $0x18] sm:$0xff]  ;;  %v2520_v28 = vld [vmem:[%s3310_s1 + $0x20] sm:$0xff]  ;;  %v2521_v32 = vld [vmem:[%s3310_s1 + $0x28] sm:$0xff] }
   0x9   :  { %v2544_v25 = vld [vmem:[%s3311_s2 + $0x18] sm:$0xff]  ;;  %v2545_v29 = vld [vmem:[%s3311_s2 + $0x20] sm:$0xff]  ;;  %v2546_v33 = vld [vmem:[%s3311_s2 + $0x28] sm:$0xff] }
   0xa   :  { %325 = vmatpush.bf16.msra.mxu0 %v2489_v7  ;;  %709 = vmatpush.bf16.msra.mxu1 %v2489_v7  ;;  %v2569_v26 = vld [vmem:[%s3312_s3 + $0x18] sm:$0xff]  ;;  %v2570_v30 = vld [vmem:[%s3312_s3 + $0x20] sm:$0xff]  ;;  %v2571_v34 = vld [vmem:[%s3312_s3 + $0x28] sm:$0xff] }
   0xb   :  { %1093 = vmatpush.bf16.msra.mxu2 %v2489_v7  ;;  %1477 = vmatpush.bf16.msra.mxu3 %v2489_v7  ;;  %v2497_v35 = vld [vmem:[%s3309_s0 + $0x30] sm:$0xff]  ;;  %v2498_v39 = vld [vmem:[%s3309_s0 + $0x38] sm:$0xff]  ;;  %v2499_v43 = vld [vmem:[%s3309_s0 + $0x40] sm:$0xff] }
   0xc   :  { %v2522_v36 = vld [vmem:[%s3310_s1 + $0x30] sm:$0xff]  ;;  %v2523_v40 = vld [vmem:[%s3310_s1 + $0x38] sm:$0xff]  ;;  %v2524_v44 = vld [vmem:[%s3310_s1 + $0x40] sm:$0xff] }
   0xd   :  { %v2547_v37 = vld [vmem:[%s3311_s2 + $0x30] sm:$0xff]  ;;  %v2548_v41 = vld [vmem:[%s3311_s2 + $0x38] sm:$0xff]  ;;  %v2549_v47 = vld [vmem:[%s3311_s2 + $0x40] sm:$0xff] }
   0xe   :  { %326 = vmatpush.bf16.msra.mxu0 %v2488_v8  ;;  %710 = vmatpush.bf16.msra.mxu1 %v2488_v8  ;;  %v2572_v38 = vld [vmem:[%s3312_s3 + $0x30] sm:$0xff]  ;;  %v2573_v42 = vld [vmem:[%s3312_s3 + $0x38] sm:$0xff]  ;;  %v2574_v48 = vld [vmem:[%s3312_s3 + $0x40] sm:$0xff] }
   0xf   :  { %1094 = vmatpush.bf16.msra.mxu2 %v2488_v8  ;;  %1478 = vmatpush.bf16.msra.mxu3 %v2488_v8  ;;  %v2795_v53 = vld [vmem:[%s3313_s5] ss:$0 sm:$0xff]  ;;  %v2500_v61 = vld [vmem:[%s3309_s0 + $0x48] sm:$0xff] }
  0x10   :  { %v2525_v62 = vld [vmem:[%s3310_s1 + $0x48] sm:$0xff] }
  0x11   :  { %v2550_v4 = vld [vmem:[%s3311_s2 + $0x48] sm:$0xff] }
  0x12   :  { %327 = vmatpush.bf16.msra.mxu0 %v2487_v9  ;;  %711 = vmatpush.bf16.msra.mxu1 %v2487_v9  ;;  %v2575_v5 = vld [vmem:[%s3312_s3 + $0x48] sm:$0xff] }
  0x13   :  { %1095 = vmatpush.bf16.msra.mxu2 %v2487_v9  ;;  %1479 = vmatpush.bf16.msra.mxu3 %v2487_v9 }
  0x16   :  { %328 = vmatpush.bf16.msra.mxu0 %v2486_v10  ;;  %712 = vmatpush.bf16.msra.mxu1 %v2486_v10 }
  0x17   :  { %1096 = vmatpush.bf16.msra.mxu2 %v2486_v10  ;;  %1480 = vmatpush.bf16.msra.mxu3 %v2486_v10 }
  0x19   :  { %2086 = vmatmul.msk.bf16.vlgmr.msra.gmra.mxu0 %vm238_vm2, %v2491_v11  ;;  %2211 = vmatmul.msk.bf16.vlgmr.msra.gmra.mxu1 %vm238_vm2, %v2516_v12 }
  0x1a   :  { %2336 = vmatmul.msk.bf16.vlgmr.msra.gmra.mxu2 %vm238_vm2, %v2541_v13  ;;  %2461 = vmatmul.msk.bf16.vlgmr.msra.gmra.mxu3 %vm238_vm2, %v2566_v14 }
  0x29   :  { %2087 = vmatmul.msk.bf16.gmra.mxu0 %vm238_vm2, %v2492_v15  ;;  %2212 = vmatmul.msk.bf16.gmra.mxu1 %vm238_vm2, %v2517_v16 }
  0x2a   :  { %2337 = vmatmul.msk.bf16.gmra.mxu2 %vm238_vm2, %v2542_v17  ;;  %2462 = vmatmul.msk.bf16.gmra.mxu3 %vm238_vm2, %v2567_v18 }
  0x39   :  { %2088 = vmatmul.msk.bf16.gmra.mxu0 %vm238_vm2, %v2493_v19  ;;  %2213 = vmatmul.msk.bf16.gmra.mxu1 %vm238_vm2, %v2518_v20 }
  0x3a   :  { %2338 = vmatmul.msk.bf16.gmra.mxu2 %vm238_vm2, %v2543_v21  ;;  %2463 = vmatmul.msk.bf16.gmra.mxu3 %vm238_vm2, %v2568_v22  ;;  %v2501_v21 = vld [vmem:[%s3309_s0 + $0x50] sm:$0xff] }
  0x3b   :  { %v2526_v22 = vld [vmem:[%s3310_s1 + $0x50] sm:$0xff] }
  0x49   :  { %2089 = vmatmul.msk.bf16.gmra.mxu0 %vm238_vm2, %v2494_v23  ;;  %2214 = vmatmul.msk.bf16.gmra.mxu1 %vm238_vm2, %v2519_v24 }
  0x4a   :  { %2339 = vmatmul.msk.bf16.gmra.mxu2 %vm238_vm2, %v2544_v25  ;;  %2464 = vmatmul.msk.bf16.gmra.mxu3 %vm238_vm2, %v2569_v26 }
  0x59   :  { %2090 = vmatmul.msk.bf16.gmra.mxu0 %vm238_vm2, %v2495_v27  ;;  %2215 = vmatmul.msk.bf16.gmra.mxu1 %vm238_vm2, %v2520_v28  ;;  %v2551_v28 = vld [vmem:[%s3311_s2 + $0x50] sm:$0xff] }
  0x5a   :  { %2340 = vmatmul.msk.bf16.gmra.mxu2 %vm238_vm2, %v2545_v29  ;;  %2465 = vmatmul.msk.bf16.gmra.mxu3 %vm238_vm2, %v2570_v30  ;;  %v2576_v29 = vld [vmem:[%s3312_s3 + $0x50] sm:$0xff] }
  0x69   :  { %2091 = vmatmul.msk.bf16.gmra.mxu0 %vm238_vm2, %v2496_v31  ;;  %2216 = vmatmul.msk.bf16.gmra.mxu1 %vm238_vm2, %v2521_v32 }
  0x6a   :  { %2341 = vmatmul.msk.bf16.gmra.mxu2 %vm238_vm2, %v2546_v33  ;;  %2466 = vmatmul.msk.bf16.gmra.mxu3 %vm238_vm2, %v2571_v34 }
  0x79   :  { %2092 = vmatmul.msk.bf16.gmra.mxu0 %vm238_vm2, %v2497_v35  ;;  %2217 = vmatmul.msk.bf16.gmra.mxu1 %vm238_vm2, %v2522_v36 }
  0x7a   :  { %2342 = vmatmul.msk.bf16.gmra.mxu2 %vm238_vm2, %v2547_v37  ;;  %2467 = vmatmul.msk.bf16.gmra.mxu3 %vm238_vm2, %v2572_v38 }
  0x89   :  { %2093 = vmatmul.msk.bf16.gmra.mxu0 %vm238_vm2, %v2498_v39  ;;  %2218 = vmatmul.msk.bf16.gmra.mxu1 %vm238_vm2, %v2523_v40 }
  0x8a   :  { %2343 = vmatmul.msk.bf16.gmra.mxu2 %vm238_vm2, %v2548_v41  ;;  %2468 = vmatmul.msk.bf16.gmra.mxu3 %vm238_vm2, %v2573_v42 }
  0x96   :  { %v330_v45 = vpop.f32.mrf.mxu0  ;;  %v714_v46 = vpop.f32.mrf.mxu1 }
  0x97   :  { %v1607_v49 = vmax.f32 %v330_v45, %v714_v46  ;;  %v2502_v45 = vld [vmem:[%s3309_s0 + $0x58] sm:$0xff] }
  0x98   :  { %v2527_v46 = vld [vmem:[%s3310_s1 + $0x58] sm:$0xff] }
  0x99   :  { %2094 = vmatmul.msk.bf16.gmra.mxu0 %vm238_vm2, %v2499_v43  ;;  %2219 = vmatmul.msk.bf16.gmra.mxu1 %vm238_vm2, %v2524_v44 }
  0x9a   :  { %2344 = vmatmul.msk.bf16.gmra.mxu2 %vm238_vm2, %v2549_v47  ;;  %2469 = vmatmul.msk.bf16.gmra.mxu3 %vm238_vm2, %v2574_v48 }
  0x9d   :  { %v1098_v50 = vpop.f32.mrf.mxu2  ;;  %v1482_v51 = vpop.f32.mrf.mxu3 }
  0x9e   :  { %v1657_v52 = vmax.f32 %v1098_v50, %v1482_v51  ;;  %v332_v54 = vpop.f32.mrf.mxu0  ;;  %v716_v55 = vpop.f32.mrf.mxu1 }
  0x9f   :  { %v1608_v0 = vmax.f32 %v332_v54, %v716_v55  ;;  %v2577_v54 = vld [vmem:[%s3312_s3 + $0x58] sm:$0xff] }
  0xa0   :  { %v1707_v56 = vmax.f32 %v1607_v49, %v1657_v52  ;;  %v2552_v52 = vld [vmem:[%s3311_s2 + $0x58] sm:$0xff] }
  0xa2   :  { %v1761_v57 = vadd.f32 %v2795_v53, %v1707_v56 }
  0xa4   :  { %v1811_v58 = vmax.f32 %v1761_v57, 0.0 }
  0xa5   :  { %v1100_v59 = vpop.f32.mrf.mxu2  ;;  %v1484_v60 = vpop.f32.mrf.mxu3 }
  0xa6   :  { %v1861_v63 = vpack.c.bf16 %v1811_v58, %v1811_v58  ;;  %v1658_v1 = vmax.f32 %v1100_v59, %v1484_v60  ;;  %v335_v2 = vpop.f32.mrf.mxu0  ;;  %v719_v3 = vpop.f32.mrf.mxu1 }
  0xa7   :  { %v1609_v9 = vmax.f32 %v335_v2, %v719_v3 }
  0xa8   :  { %1912 = vst.msk [vmem:[%s3314_s6] sm:$0xf] %vm1911_vm3, %v1861_v63  ;;  %v1708_v6 = vmax.f32 %v1608_v0, %v1658_v1 }
  0xa9   :  { %2095 = vmatmul.msk.bf16.gmra.mxu0 %vm238_vm2, %v2500_v61  ;;  %2220 = vmatmul.msk.bf16.gmra.mxu1 %vm238_vm2, %v2525_v62 }
  0xaa   :  { %v1762_v7 = vadd.f32 %v2795_v53, %v1708_v6  ;;  %2345 = vmatmul.msk.bf16.gmra.mxu2 %vm238_vm2, %v2550_v4  ;;  %2470 = vmatmul.msk.bf16.gmra.mxu3 %vm238_vm2, %v2575_v5  ;;  %v2503_v6 = vld [vmem:[%s3309_s0 + $0x60] sm:$0xff] }
  0xac   :  { %v1812_v8 = vmax.f32 %v1762_v7, 0.0  ;;  %v2528_v7 = vld [vmem:[%s3310_s1 + $0x60] sm:$0xff] }
  0xad   :  { %v1103_v10 = vpop.f32.mrf.mxu2  ;;  %v1487_v11 = vpop.f32.mrf.mxu3 }
  0xae   :  { %v1862_v12 = vpack.c.bf16 %v1812_v8, %v1812_v8  ;;  %v1659_v13 = vmax.f32 %v1103_v10, %v1487_v11  ;;  %v337_v14 = vpop.f32.mrf.mxu0  ;;  %v721_v15 = vpop.f32.mrf.mxu1 }
  0xaf   :  { %v1610_v24 = vmax.f32 %v337_v14, %v721_v15  ;;  %v2578_v14 = vld [vmem:[%s3312_s3 + $0x60] sm:$0xff] }
  0xb0   :  { %1913 = vst.msk [vmem:[%s3314_s6 + $0x4] sm:$0xf] %vm1911_vm3, %v1862_v12  ;;  %v1709_v16 = vmax.f32 %v1609_v9, %v1659_v13  ;;  %v2553_v13 = vld [vmem:[%s3311_s2 + $0x60] sm:$0xff] }
  0xb2   :  { %v1763_v17 = vadd.f32 %v2795_v53, %v1709_v16 }
  0xb4   :  { %v1813_v18 = vmax.f32 %v1763_v17, 0.0 }
  0xb5   :  { %v1105_v19 = vpop.f32.mrf.mxu2  ;;  %v1489_v20 = vpop.f32.mrf.mxu3 }
  0xb6   :  { %v1863_v23 = vpack.c.bf16 %v1813_v18, %v1813_v18  ;;  %v1660_v25 = vmax.f32 %v1105_v19, %v1489_v20  ;;  %v340_v26 = vpop.f32.mrf.mxu0  ;;  %v724_v27 = vpop.f32.mrf.mxu1 }
  0xb7   :  { %v1611_v33 = vmax.f32 %v340_v26, %v724_v27 }
  0xb8   :  { %1914 = vst.msk [vmem:[%s3314_s6 + $0x8] sm:$0xf] %vm1911_vm3, %v1863_v23  ;;  %v1710_v30 = vmax.f32 %v1610_v24, %v1660_v25 }
  0xb9   :  { %2096 = vmatmul.msk.bf16.gmra.mxu0 %vm238_vm2, %v2501_v21  ;;  %2221 = vmatmul.msk.bf16.gmra.mxu1 %vm238_vm2, %v2526_v22 }
  0xba   :  { %v1764_v31 = vadd.f32 %v2795_v53, %v1710_v30  ;;  %2346 = vmatmul.msk.bf16.gmra.mxu2 %vm238_vm2, %v2551_v28  ;;  %2471 = vmatmul.msk.bf16.gmra.mxu3 %vm238_vm2, %v2576_v29  ;;  %v2504_v30 = vld [vmem:[%s3309_s0 + $0x68] sm:$0xff] }
  0xbc   :  { %v1814_v32 = vmax.f32 %v1764_v31, 0.0  ;;  %v2529_v31 = vld [vmem:[%s3310_s1 + $0x68] sm:$0xff] }
  0xbd   :  { %v1108_v34 = vpop.f32.mrf.mxu2  ;;  %v1492_v35 = vpop.f32.mrf.mxu3 }
  0xbe   :  { %v1864_v36 = vpack.c.bf16 %v1814_v32, %v1814_v32  ;;  %v1661_v37 = vmax.f32 %v1108_v34, %v1492_v35  ;;  %v342_v38 = vpop.f32.mrf.mxu0  ;;  %v726_v39 = vpop.f32.mrf.mxu1 }
  0xbf   :  { %v1612_v48 = vmax.f32 %v342_v38, %v726_v39  ;;  %v2579_v38 = vld [vmem:[%s3312_s3 + $0x68] sm:$0xff] }
  0xc0   :  { %1915 = vst.msk [vmem:[%s3314_s6 + $0xc] sm:$0xf] %vm1911_vm3, %v1864_v36  ;;  %v1711_v40 = vmax.f32 %v1611_v33, %v1661_v37  ;;  %v2554_v37 = vld [vmem:[%s3311_s2 + $0x68] sm:$0xff] }
  0xc2   :  { %v1765_v41 = vadd.f32 %v2795_v53, %v1711_v40 }
  0xc4   :  { %v1815_v42 = vmax.f32 %v1765_v41, 0.0 }
  0xc5   :  { %v1110_v43 = vpop.f32.mrf.mxu2  ;;  %v1494_v44 = vpop.f32.mrf.mxu3 }
  0xc6   :  { %v1865_v47 = vpack.c.bf16 %v1815_v42, %v1815_v42  ;;  %v1662_v49 = vmax.f32 %v1110_v43, %v1494_v44  ;;  %v345_v50 = vpop.f32.mrf.mxu0  ;;  %v729_v51 = vpop.f32.mrf.mxu1 }
  0xc7   :  { %v1613_v58 = vmax.f32 %v345_v50, %v729_v51 }
  0xc8   :  { %1916 = vst.msk [vmem:[%s3314_s6 + $0x10] sm:$0xf] %vm1911_vm3, %v1865_v47  ;;  %v1712_v55 = vmax.f32 %v1612_v48, %v1662_v49 }
  0xc9   :  { %2097 = vmatmul.msk.bf16.gmra.mxu0 %vm238_vm2, %v2502_v45  ;;  %2222 = vmatmul.msk.bf16.gmra.mxu1 %vm238_vm2, %v2527_v46 }
  0xca   :  { %v1766_v56 = vadd.f32 %v2795_v53, %v1712_v55  ;;  %2347 = vmatmul.msk.bf16.gmra.mxu2 %vm238_vm2, %v2552_v52  ;;  %2472 = vmatmul.msk.bf16.gmra.mxu3 %vm238_vm2, %v2577_v54  ;;  %v2505_v55 = vld [vmem:[%s3309_s0 + $0x70] sm:$0xff] }
  0xcc   :  { %v1816_v57 = vmax.f32 %v1766_v56, 0.0  ;;  %v2530_v56 = vld [vmem:[%s3310_s1 + $0x70] sm:$0xff] }
  0xcd   :  { %v1113_v59 = vpop.f32.mrf.mxu2  ;;  %v1497_v60 = vpop.f32.mrf.mxu3 }
  0xce   :  { %v1866_v61 = vpack.c.bf16 %v1816_v57, %v1816_v57  ;;  %v1663_v62 = vmax.f32 %v1113_v59, %v1497_v60  ;;  %v347_v63 = vpop.f32.mrf.mxu0  ;;  %v731_v0 = vpop.f32.mrf.mxu1 }
  0xcf   :  { %v1614_v9 = vmax.f32 %v347_v63, %v731_v0  ;;  %v2580_v63 = vld [vmem:[%s3312_s3 + $0x70] sm:$0xff] }
  0xd0   :  { %1917 = vst.msk [vmem:[%s3314_s6 + $0x14] sm:$0xf] %vm1911_vm3, %v1866_v61  ;;  %v1713_v1 = vmax.f32 %v1613_v58, %v1663_v62  ;;  %v2555_v62 = vld [vmem:[%s3311_s2 + $0x70] sm:$0xff] }
  0xd2   :  { %v1767_v2 = vadd.f32 %v2795_v53, %v1713_v1 }
  0xd4   :  { %v1817_v3 = vmax.f32 %v1767_v2, 0.0 }
  0xd5   :  { %v1115_v4 = vpop.f32.mrf.mxu2  ;;  %v1499_v5 = vpop.f32.mrf.mxu3 }
  0xd6   :  { %v1867_v8 = vpack.c.bf16 %v1817_v3, %v1817_v3  ;;  %v1664_v10 = vmax.f32 %v1115_v4, %v1499_v5  ;;  %v350_v11 = vpop.f32.mrf.mxu0  ;;  %v734_v12 = vpop.f32.mrf.mxu1 }
  0xd7   :  { %v1615_v18 = vmax.f32 %v350_v11, %v734_v12 }
  0xd8   :  { %1918 = vst.msk [vmem:[%s3314_s6 + $0x18] sm:$0xf] %vm1911_vm3, %v1867_v8  ;;  %v1714_v15 = vmax.f32 %v1614_v9, %v1664_v10 }
  0xd9   :  { %2098 = vmatmul.msk.bf16.gmra.mxu0 %vm238_vm2, %v2503_v6  ;;  %2223 = vmatmul.msk.bf16.gmra.mxu1 %vm238_vm2, %v2528_v7 }
  0xda   :  { %v1768_v16 = vadd.f32 %v2795_v53, %v1714_v15  ;;  %2348 = vmatmul.msk.bf16.gmra.mxu2 %vm238_vm2, %v2553_v13  ;;  %2473 = vmatmul.msk.bf16.gmra.mxu3 %vm238_vm2, %v2578_v14  ;;  %v2506_v15 = vld [vmem:[%s3309_s0 + $0x78] sm:$0xff] }
  0xdc   :  { %v1818_v17 = vmax.f32 %v1768_v16, 0.0  ;;  %v2531_v16 = vld [vmem:[%s3310_s1 + $0x78] sm:$0xff] }
  0xdd   :  { %v1118_v19 = vpop.f32.mrf.mxu2  ;;  %v1502_v20 = vpop.f32.mrf.mxu3 }
  0xde   :  { %v1868_v21 = vpack.c.bf16 %v1818_v17, %v1818_v17  ;;  %v1665_v22 = vmax.f32 %v1118_v19, %v1502_v20  ;;  %v352_v23 = vpop.f32.mrf.mxu0  ;;  %v736_v24 = vpop.f32.mrf.mxu1 }
  0xdf   :  { %v1616_v33 = vmax.f32 %v352_v23, %v736_v24  ;;  %v2581_v23 = vld [vmem:[%s3312_s3 + $0x78] sm:$0xff] }
  0xe0   :  { %1919 = vst.msk [vmem:[%s3314_s6 + $0x1c] sm:$0xf] %vm1911_vm3, %v1868_v21  ;;  %v1715_v25 = vmax.f32 %v1615_v18, %v1665_v22  ;;  %v2556_v22 = vld [vmem:[%s3311_s2 + $0x78] sm:$0xff] }
  0xe2   :  { %v1769_v26 = vadd.f32 %v2795_v53, %v1715_v25 }
  0xe4   :  { %v1819_v27 = vmax.f32 %v1769_v26, 0.0 }
  0xe5   :  { %v1120_v28 = vpop.f32.mrf.mxu2  ;;  %v1504_v29 = vpop.f32.mrf.mxu3 }
  0xe6   :  { %v1869_v32 = vpack.c.bf16 %v1819_v27, %v1819_v27  ;;  %v1666_v34 = vmax.f32 %v1120_v28, %v1504_v29  ;;  %v355_v35 = vpop.f32.mrf.mxu0  ;;  %v739_v36 = vpop.f32.mrf.mxu1 }
  0xe7   :  { %v1617_v42 = vmax.f32 %v355_v35, %v739_v36 }
  0xe8   :  { %1920 = vst.msk [vmem:[%s3314_s6 + $0x20] sm:$0xf] %vm1911_vm3, %v1869_v32  ;;  %v1716_v39 = vmax.f32 %v1616_v33, %v1666_v34 }
  0xe9   :  { %2099 = vmatmul.msk.bf16.gmra.mxu0 %vm238_vm2, %v2504_v30  ;;  %2224 = vmatmul.msk.bf16.gmra.mxu1 %vm238_vm2, %v2529_v31 }
  0xea   :  { %v1770_v40 = vadd.f32 %v2795_v53, %v1716_v39  ;;  %2349 = vmatmul.msk.bf16.gmra.mxu2 %vm238_vm2, %v2554_v37  ;;  %2474 = vmatmul.msk.bf16.gmra.mxu3 %vm238_vm2, %v2579_v38  ;;  %v2507_v39 = vld [vmem:[%s3309_s0 + $0x80] sm:$0xff] }
  0xec   :  { %v1820_v41 = vmax.f32 %v1770_v40, 0.0  ;;  %v2532_v40 = vld [vmem:[%s3310_s1 + $0x80] sm:$0xff] }
  0xed   :  { %v1123_v43 = vpop.f32.mrf.mxu2  ;;  %v1507_v44 = vpop.f32.mrf.mxu3 }
  0xee   :  { %v1870_v45 = vpack.c.bf16 %v1820_v41, %v1820_v41  ;;  %v1667_v46 = vmax.f32 %v1123_v43, %v1507_v44  ;;  %v357_v47 = vpop.f32.mrf.mxu0  ;;  %v741_v48 = vpop.f32.mrf.mxu1 }
  0xef   :  { %v1618_v58 = vmax.f32 %v357_v47, %v741_v48  ;;  %v2582_v47 = vld [vmem:[%s3312_s3 + $0x80] sm:$0xff] }
  0xf0   :  { %1921 = vst.msk [vmem:[%s3314_s6 + $0x24] sm:$0xf] %vm1911_vm3, %v1870_v45  ;;  %v1717_v49 = vmax.f32 %v1617_v42, %v1667_v46  ;;  %v2557_v46 = vld [vmem:[%s3311_s2 + $0x80] sm:$0xff] }
  0xf2   :  { %v1771_v50 = vadd.f32 %v2795_v53, %v1717_v49 }
  0xf4   :  { %v1821_v51 = vmax.f32 %v1771_v50, 0.0 }
  0xf5   :  { %v1125_v52 = vpop.f32.mrf.mxu2  ;;  %v1509_v54 = vpop.f32.mrf.mxu3 }
  0xf6   :  { %v1871_v57 = vpack.c.bf16 %v1821_v51, %v1821_v51  ;;  %v1668_v59 = vmax.f32 %v1125_v52, %v1509_v54  ;;  %v360_v60 = vpop.f32.mrf.mxu0  ;;  %v744_v61 = vpop.f32.mrf.mxu1 }
  0xf7   :  { %v1619_v3 = vmax.f32 %v360_v60, %v744_v61 }
  0xf8   :  { %1922 = vst.msk [vmem:[%s3314_s6 + $0x28] sm:$0xf] %vm1911_vm3, %v1871_v57  ;;  %v1718_v0 = vmax.f32 %v1618_v58, %v1668_v59 }
  0xf9   :  { %2100 = vmatmul.msk.bf16.gmra.mxu0 %vm238_vm2, %v2505_v55  ;;  %2225 = vmatmul.msk.bf16.gmra.mxu1 %vm238_vm2, %v2530_v56 }
  0xfa   :  { %v1772_v1 = vadd.f32 %v2795_v53, %v1718_v0  ;;  %2350 = vmatmul.msk.bf16.gmra.mxu2 %vm238_vm2, %v2555_v62  ;;  %2475 = vmatmul.msk.bf16.gmra.mxu3 %vm238_vm2, %v2580_v63  ;;  %v2508_v0 = vld [vmem:[%s3309_s0 + $0x88] sm:$0xff] }
  0xfc   :  { %v1822_v2 = vmax.f32 %v1772_v1, 0.0  ;;  %v2533_v1 = vld [vmem:[%s3310_s1 + $0x88] sm:$0xff] }
  0xfd   :  { %v1128_v4 = vpop.f32.mrf.mxu2  ;;  %v1512_v5 = vpop.f32.mrf.mxu3 }
  0xfe   :  { %v1872_v6 = vpack.c.bf16 %v1822_v2, %v1822_v2  ;;  %v1669_v7 = vmax.f32 %v1128_v4, %v1512_v5  ;;  %v362_v8 = vpop.f32.mrf.mxu0  ;;  %v746_v9 = vpop.f32.mrf.mxu1 }
  0xff   :  { %v1620_v18 = vmax.f32 %v362_v8, %v746_v9  ;;  %v2583_v8 = vld [vmem:[%s3312_s3 + $0x88] sm:$0xff] }
 0x100   :  { %1923 = vst.msk [vmem:[%s3314_s6 + $0x2c] sm:$0xf] %vm1911_vm3, %v1872_v6  ;;  %v1719_v10 = vmax.f32 %v1619_v3, %v1669_v7  ;;  %v2558_v7 = vld [vmem:[%s3311_s2 + $0x88] sm:$0xff] }
 0x102   :  { %v1773_v11 = vadd.f32 %v2795_v53, %v1719_v10 }
 0x104   :  { %v1823_v12 = vmax.f32 %v1773_v11, 0.0 }
 0x105   :  { %v1130_v13 = vpop.f32.mrf.mxu2  ;;  %v1514_v14 = vpop.f32.mrf.mxu3 }
 0x106   :  { %v1873_v17 = vpack.c.bf16 %v1823_v12, %v1823_v12  ;;  %v1670_v19 = vmax.f32 %v1130_v13, %v1514_v14  ;;  %v365_v20 = vpop.f32.mrf.mxu0  ;;  %v749_v21 = vpop.f32.mrf.mxu1 }
 0x107   :  { %v1621_v27 = vmax.f32 %v365_v20, %v749_v21 }
 0x108   :  { %1924 = vst.msk [vmem:[%s3314_s6 + $0x30] sm:$0xf] %vm1911_vm3, %v1873_v17  ;;  %v1720_v24 = vmax.f32 %v1620_v18, %v1670_v19 }
 0x109   :  { %2101 = vmatmul.msk.bf16.gmra.mxu0 %vm238_vm2, %v2506_v15  ;;  %2226 = vmatmul.msk.bf16.gmra.mxu1 %vm238_vm2, %v2531_v16 }
 0x10a   :  { %v1774_v25 = vadd.f32 %v2795_v53, %v1720_v24  ;;  %2351 = vmatmul.msk.bf16.gmra.mxu2 %vm238_vm2, %v2556_v22  ;;  %2476 = vmatmul.msk.bf16.gmra.mxu3 %vm238_vm2, %v2581_v23  ;;  %v2509_v24 = vld [vmem:[%s3309_s0 + $0x90] sm:$0xff] }
 0x10c   :  { %v1824_v26 = vmax.f32 %v1774_v25, 0.0  ;;  %v2534_v25 = vld [vmem:[%s3310_s1 + $0x90] sm:$0xff] }
 0x10d   :  { %v1133_v28 = vpop.f32.mrf.mxu2  ;;  %v1517_v29 = vpop.f32.mrf.mxu3 }
 0x10e   :  { %v1874_v30 = vpack.c.bf16 %v1824_v26, %v1824_v26  ;;  %v1671_v31 = vmax.f32 %v1133_v28, %v1517_v29  ;;  %v367_v32 = vpop.f32.mrf.mxu0  ;;  %v751_v33 = vpop.f32.mrf.mxu1 }
 0x10f   :  { %v1622_v42 = vmax.f32 %v367_v32, %v751_v33  ;;  %v2584_v32 = vld [vmem:[%s3312_s3 + $0x90] sm:$0xff] }
 0x110   :  { %1925 = vst.msk [vmem:[%s3314_s6 + $0x34] sm:$0xf] %vm1911_vm3, %v1874_v30  ;;  %v1721_v34 = vmax.f32 %v1621_v27, %v1671_v31  ;;  %v2559_v31 = vld [vmem:[%s3311_s2 + $0x90] sm:$0xff] }
 0x112   :  { %v1775_v35 = vadd.f32 %v2795_v53, %v1721_v34 }
 0x114   :  { %v1825_v36 = vmax.f32 %v1775_v35, 0.0 }
 0x115   :  { %v1135_v37 = vpop.f32.mrf.mxu2  ;;  %v1519_v38 = vpop.f32.mrf.mxu3 }
 0x116   :  { %v1875_v41 = vpack.c.bf16 %v1825_v36, %v1825_v36  ;;  %v1672_v43 = vmax.f32 %v1135_v37, %v1519_v38  ;;  %v370_v44 = vpop.f32.mrf.mxu0  ;;  %v754_v45 = vpop.f32.mrf.mxu1 }
 0x117   :  { %v1623_v51 = vmax.f32 %v370_v44, %v754_v45 }
 0x118   :  { %1926 = vst.msk [vmem:[%s3314_s6 + $0x38] sm:$0xf] %vm1911_vm3, %v1875_v41  ;;  %v1722_v48 = vmax.f32 %v1622_v42, %v1672_v43 }
 0x119   :  { %2102 = vmatmul.msk.bf16.gmra.mxu0 %vm238_vm2, %v2507_v39  ;;  %2227 = vmatmul.msk.bf16.gmra.mxu1 %vm238_vm2, %v2532_v40 }
 0x11a   :  { %v1776_v49 = vadd.f32 %v2795_v53, %v1722_v48  ;;  %2352 = vmatmul.msk.bf16.gmra.mxu2 %vm238_vm2, %v2557_v46  ;;  %2477 = vmatmul.msk.bf16.gmra.mxu3 %vm238_vm2, %v2582_v47  ;;  %v2510_v48 = vld [vmem:[%s3309_s0 + $0x98] sm:$0xff] }
 0x11c   :  { %v1826_v50 = vmax.f32 %v1776_v49, 0.0  ;;  %v2535_v49 = vld [vmem:[%s3310_s1 + $0x98] sm:$0xff] }
 0x11d   :  { %v1138_v52 = vpop.f32.mrf.mxu2  ;;  %v1522_v54 = vpop.f32.mrf.mxu3 }
 0x11e   :  { %v1876_v55 = vpack.c.bf16 %v1826_v50, %v1826_v50  ;;  %v1673_v56 = vmax.f32 %v1138_v52, %v1522_v54  ;;  %v372_v57 = vpop.f32.mrf.mxu0  ;;  %v756_v58 = vpop.f32.mrf.mxu1 }
 0x11f   :  { %v1624_v3 = vmax.f32 %v372_v57, %v756_v58  ;;  %v2585_v57 = vld [vmem:[%s3312_s3 + $0x98] sm:$0xff] }
 0x120   :  { %1927 = vst.msk [vmem:[%s3314_s6 + $0x3c] sm:$0xf] %vm1911_vm3, %v1876_v55  ;;  %v1723_v59 = vmax.f32 %v1623_v51, %v1673_v56  ;;  %v2560_v56 = vld [vmem:[%s3311_s2 + $0x98] sm:$0xff] }
 0x122   :  { %v1777_v60 = vadd.f32 %v2795_v53, %v1723_v59 }
 0x124   :  { %v1827_v61 = vmax.f32 %v1777_v60, 0.0 }
 0x125   :  { %v1140_v62 = vpop.f32.mrf.mxu2  ;;  %v1524_v63 = vpop.f32.mrf.mxu3 }
 0x126   :  { %v1877_v2 = vpack.c.bf16 %v1827_v61, %v1827_v61  ;;  %v1674_v4 = vmax.f32 %v1140_v62, %v1524_v63  ;;  %v375_v5 = vpop.f32.mrf.mxu0  ;;  %v759_v6 = vpop.f32.mrf.mxu1 }
 0x127   :  { %v1625_v12 = vmax.f32 %v375_v5, %v759_v6 }
 0x128   :  { %1928 = vst.msk [vmem:[%s3314_s6 + $0x40] sm:$0xf] %vm1911_vm3, %v1877_v2  ;;  %v1724_v9 = vmax.f32 %v1624_v3, %v1674_v4 }
 0x129   :  { %2103 = vmatmul.msk.bf16.gmra.mxu0 %vm238_vm2, %v2508_v0  ;;  %2228 = vmatmul.msk.bf16.gmra.mxu1 %vm238_vm2, %v2533_v1 }
 0x12a   :  { %v1778_v10 = vadd.f32 %v2795_v53, %v1724_v9  ;;  %2353 = vmatmul.msk.bf16.gmra.mxu2 %vm238_vm2, %v2558_v7  ;;  %2478 = vmatmul.msk.bf16.gmra.mxu3 %vm238_vm2, %v2583_v8  ;;  %v2511_v9 = vld [vmem:[%s3309_s0 + $0xa0] sm:$0xff] }
 0x12c   :  { %v1828_v11 = vmax.f32 %v1778_v10, 0.0  ;;  %v2536_v10 = vld [vmem:[%s3310_s1 + $0xa0] sm:$0xff] }
 0x12d   :  { %v1143_v13 = vpop.f32.mrf.mxu2  ;;  %v1527_v14 = vpop.f32.mrf.mxu3 }
 0x12e   :  { %v1878_v15 = vpack.c.bf16 %v1828_v11, %v1828_v11  ;;  %v1675_v16 = vmax.f32 %v1143_v13, %v1527_v14  ;;  %v377_v17 = vpop.f32.mrf.mxu0  ;;  %v761_v18 = vpop.f32.mrf.mxu1 }
 0x12f   :  { %v1626_v27 = vmax.f32 %v377_v17, %v761_v18  ;;  %v2586_v17 = vld [vmem:[%s3312_s3 + $0xa0] sm:$0xff] }
 0x130   :  { %1929 = vst.msk [vmem:[%s3314_s6 + $0x44] sm:$0xf] %vm1911_vm3, %v1878_v15  ;;  %v1725_v19 = vmax.f32 %v1625_v12, %v1675_v16  ;;  %v2561_v16 = vld [vmem:[%s3311_s2 + $0xa0] sm:$0xff] }
 0x132   :  { %v1779_v20 = vadd.f32 %v2795_v53, %v1725_v19 }
 0x134   :  { %v1829_v21 = vmax.f32 %v1779_v20, 0.0 }
 0x135   :  { %v1145_v22 = vpop.f32.mrf.mxu2  ;;  %v1529_v23 = vpop.f32.mrf.mxu3 }
 0x136   :  { %v1879_v26 = vpack.c.bf16 %v1829_v21, %v1829_v21  ;;  %v1676_v28 = vmax.f32 %v1145_v22, %v1529_v23  ;;  %v380_v29 = vpop.f32.mrf.mxu0  ;;  %v764_v30 = vpop.f32.mrf.mxu1 }
 0x137   :  { %v1627_v36 = vmax.f32 %v380_v29, %v764_v30 }
 0x138   :  { %1930 = vst.msk [vmem:[%s3314_s6 + $0x48] sm:$0xf] %vm1911_vm3, %v1879_v26  ;;  %v1726_v33 = vmax.f32 %v1626_v27, %v1676_v28 }
 0x139   :  { %2104 = vmatmul.msk.bf16.gmra.mxu0 %vm238_vm2, %v2509_v24  ;;  %2229 = vmatmul.msk.bf16.gmra.mxu1 %vm238_vm2, %v2534_v25 }
 0x13a   :  { %v1780_v34 = vadd.f32 %v2795_v53, %v1726_v33  ;;  %2354 = vmatmul.msk.bf16.gmra.mxu2 %vm238_vm2, %v2559_v31  ;;  %2479 = vmatmul.msk.bf16.gmra.mxu3 %vm238_vm2, %v2584_v32  ;;  %v2512_v33 = vld [vmem:[%s3309_s0 + $0xa8] sm:$0xff] }
 0x13c   :  { %v1830_v35 = vmax.f32 %v1780_v34, 0.0  ;;  %v2537_v34 = vld [vmem:[%s3310_s1 + $0xa8] sm:$0xff] }
 0x13d   :  { %v1148_v37 = vpop.f32.mrf.mxu2  ;;  %v1532_v38 = vpop.f32.mrf.mxu3 }
 0x13e   :  { %v1880_v39 = vpack.c.bf16 %v1830_v35, %v1830_v35  ;;  %v1677_v40 = vmax.f32 %v1148_v37, %v1532_v38  ;;  %v382_v41 = vpop.f32.mrf.mxu0  ;;  %v766_v42 = vpop.f32.mrf.mxu1 }
 0x13f   :  { %v1628_v51 = vmax.f32 %v382_v41, %v766_v42  ;;  %v2587_v41 = vld [vmem:[%s3312_s3 + $0xa8] sm:$0xff] }
 0x140   :  { %1931 = vst.msk [vmem:[%s3314_s6 + $0x4c] sm:$0xf] %vm1911_vm3, %v1880_v39  ;;  %v1727_v43 = vmax.f32 %v1627_v36, %v1677_v40  ;;  %v2562_v40 = vld [vmem:[%s3311_s2 + $0xa8] sm:$0xff] }
 0x142   :  { %v1781_v44 = vadd.f32 %v2795_v53, %v1727_v43 }
 0x144   :  { %v1831_v45 = vmax.f32 %v1781_v44, 0.0 }
 0x145   :  { %v1150_v46 = vpop.f32.mrf.mxu2  ;;  %v1534_v47 = vpop.f32.mrf.mxu3 }
 0x146   :  { %v1881_v50 = vpack.c.bf16 %v1831_v45, %v1831_v45  ;;  %v1678_v52 = vmax.f32 %v1150_v46, %v1534_v47  ;;  %v385_v54 = vpop.f32.mrf.mxu0  ;;  %v769_v55 = vpop.f32.mrf.mxu1 }
 0x147   :  { %v1629_v61 = vmax.f32 %v385_v54, %v769_v55 }
 0x148   :  { %1932 = vst.msk [vmem:[%s3314_s6 + $0x50] sm:$0xf] %vm1911_vm3, %v1881_v50  ;;  %v1728_v58 = vmax.f32 %v1628_v51, %v1678_v52 }
 0x149   :  { %2105 = vmatmul.msk.bf16.gmra.mxu0 %vm238_vm2, %v2510_v48  ;;  %2230 = vmatmul.msk.bf16.gmra.mxu1 %vm238_vm2, %v2535_v49 }
 0x14a   :  { %v1782_v59 = vadd.f32 %v2795_v53, %v1728_v58  ;;  %2355 = vmatmul.msk.bf16.gmra.mxu2 %vm238_vm2, %v2560_v56  ;;  %2480 = vmatmul.msk.bf16.gmra.mxu3 %vm238_vm2, %v2585_v57  ;;  %v2513_v58 = vld [vmem:[%s3309_s0 + $0xb0] sm:$0xff] }
 0x14c   :  { %v1832_v60 = vmax.f32 %v1782_v59, 0.0  ;;  %v2538_v59 = vld [vmem:[%s3310_s1 + $0xb0] sm:$0xff] }
 0x14d   :  { %v1153_v62 = vpop.f32.mrf.mxu2  ;;  %v1537_v63 = vpop.f32.mrf.mxu3 }
 0x14e   :  { %v1882_v0 = vpack.c.bf16 %v1832_v60, %v1832_v60  ;;  %v1679_v1 = vmax.f32 %v1153_v62, %v1537_v63  ;;  %v387_v2 = vpop.f32.mrf.mxu0  ;;  %v771_v3 = vpop.f32.mrf.mxu1 }
 0x14f   :  { %v1630_v12 = vmax.f32 %v387_v2, %v771_v3  ;;  %v2588_v2 = vld [vmem:[%s3312_s3 + $0xb0] sm:$0xff] }
 0x150   :  { %1933 = vst.msk [vmem:[%s3314_s6 + $0x54] sm:$0xf] %vm1911_vm3, %v1882_v0  ;;  %v1729_v4 = vmax.f32 %v1629_v61, %v1679_v1  ;;  %v2563_v1 = vld [vmem:[%s3311_s2 + $0xb0] sm:$0xff] }
 0x152   :  { %v1783_v5 = vadd.f32 %v2795_v53, %v1729_v4 }
 0x154   :  { %v1833_v6 = vmax.f32 %v1783_v5, 0.0 }
 0x155   :  { %v1155_v7 = vpop.f32.mrf.mxu2  ;;  %v1539_v8 = vpop.f32.mrf.mxu3 }
 0x156   :  { %v1883_v11 = vpack.c.bf16 %v1833_v6, %v1833_v6  ;;  %v1680_v13 = vmax.f32 %v1155_v7, %v1539_v8  ;;  %v390_v14 = vpop.f32.mrf.mxu0  ;;  %v774_v15 = vpop.f32.mrf.mxu1 }
 0x157   :  { %v1631_v21 = vmax.f32 %v390_v14, %v774_v15 }
 0x158   :  { %1934 = vst.msk [vmem:[%s3314_s6 + $0x58] sm:$0xf] %vm1911_vm3, %v1883_v11  ;;  %v1730_v18 = vmax.f32 %v1630_v12, %v1680_v13 }
 0x159   :  { %2106 = vmatmul.msk.bf16.gmra.mxu0 %vm238_vm2, %v2511_v9  ;;  %2231 = vmatmul.msk.bf16.gmra.mxu1 %vm238_vm2, %v2536_v10 }
 0x15a   :  { %v1784_v19 = vadd.f32 %v2795_v53, %v1730_v18  ;;  %2356 = vmatmul.msk.bf16.gmra.mxu2 %vm238_vm2, %v2561_v16  ;;  %2481 = vmatmul.msk.bf16.gmra.mxu3 %vm238_vm2, %v2586_v17  ;;  %v2514_v18 = vld [vmem:[%s3309_s0 + $0xb8] sm:$0xff] }
 0x15c   :  { %v1834_v20 = vmax.f32 %v1784_v19, 0.0  ;;  %v2539_v19 = vld [vmem:[%s3310_s1 + $0xb8] sm:$0xff] }
 0x15d   :  { %v1158_v22 = vpop.f32.mrf.mxu2  ;;  %v1542_v23 = vpop.f32.mrf.mxu3 }
 0x15e   :  { %v1884_v24 = vpack.c.bf16 %v1834_v20, %v1834_v20  ;;  %v1681_v25 = vmax.f32 %v1158_v22, %v1542_v23  ;;  %v392_v26 = vpop.f32.mrf.mxu0  ;;  %v776_v27 = vpop.f32.mrf.mxu1 }
 0x15f   :  { %v1632_v36 = vmax.f32 %v392_v26, %v776_v27  ;;  %v2589_v26 = vld [vmem:[%s3312_s3 + $0xb8] sm:$0xff] }
 0x160   :  { %1935 = vst.msk [vmem:[%s3314_s6 + $0x5c] sm:$0xf] %vm1911_vm3, %v1884_v24  ;;  %v1731_v28 = vmax.f32 %v1631_v21, %v1681_v25  ;;  %v2564_v25 = vld [vmem:[%s3311_s2 + $0xb8] sm:$0xff] }
 0x162   :  { %v1785_v29 = vadd.f32 %v2795_v53, %v1731_v28 }
 0x164   :  { %v1835_v30 = vmax.f32 %v1785_v29, 0.0 }
 0x165   :  { %v1160_v31 = vpop.f32.mrf.mxu2  ;;  %v1544_v32 = vpop.f32.mrf.mxu3 }
 0x166   :  { %v1885_v35 = vpack.c.bf16 %v1835_v30, %v1835_v30  ;;  %v1682_v37 = vmax.f32 %v1160_v31, %v1544_v32  ;;  %v395_v38 = vpop.f32.mrf.mxu0  ;;  %v779_v39 = vpop.f32.mrf.mxu1 }
 0x167   :  { %v1633_v45 = vmax.f32 %v395_v38, %v779_v39 }
 0x168   :  { %1936 = vst.msk [vmem:[%s3314_s6 + $0x60] sm:$0xf] %vm1911_vm3, %v1885_v35  ;;  %v1732_v42 = vmax.f32 %v1632_v36, %v1682_v37 }
 0x169   :  { %2107 = vmatmul.msk.bf16.gmra.mxu0 %vm238_vm2, %v2512_v33  ;;  %2232 = vmatmul.msk.bf16.gmra.mxu1 %vm238_vm2, %v2537_v34 }
 0x16a   :  { %v1786_v43 = vadd.f32 %v2795_v53, %v1732_v42  ;;  %2357 = vmatmul.msk.bf16.gmra.mxu2 %vm238_vm2, %v2562_v40  ;;  %2482 = vmatmul.msk.bf16.gmra.mxu3 %vm238_vm2, %v2587_v41  ;;  %v2515_v42 = vld [vmem:[%s3309_s0 + $0xc0] sm:$0xff] }
 0x16c   :  { %v1836_v44 = vmax.f32 %v1786_v43, 0.0  ;;  %v2540_v43 = vld [vmem:[%s3310_s1 + $0xc0] sm:$0xff] }
 0x16d   :  { %v1163_v46 = vpop.f32.mrf.mxu2  ;;  %v1547_v47 = vpop.f32.mrf.mxu3 }
 0x16e   :  { %v1886_v48 = vpack.c.bf16 %v1836_v44, %v1836_v44  ;;  %v1683_v49 = vmax.f32 %v1163_v46, %v1547_v47  ;;  %v397_v50 = vpop.f32.mrf.mxu0  ;;  %v781_v51 = vpop.f32.mrf.mxu1 }
 0x16f   :  { %v1634_v61 = vmax.f32 %v397_v50, %v781_v51  ;;  %v2590_v50 = vld [vmem:[%s3312_s3 + $0xc0] sm:$0xff] }
 0x170   :  { %1937 = vst.msk [vmem:[%s3314_s6 + $0x64] sm:$0xf] %vm1911_vm3, %v1886_v48  ;;  %v1733_v52 = vmax.f32 %v1633_v45, %v1683_v49  ;;  %v2565_v49 = vld [vmem:[%s3311_s2 + $0xc0] sm:$0xff] }
 0x172   :  { %v1787_v54 = vadd.f32 %v2795_v53, %v1733_v52 }
 0x174   :  { %v1837_v55 = vmax.f32 %v1787_v54, 0.0 }
 0x175   :  { %v1165_v56 = vpop.f32.mrf.mxu2  ;;  %v1549_v57 = vpop.f32.mrf.mxu3 }
 0x176   :  { %v1887_v60 = vpack.c.bf16 %v1837_v55, %v1837_v55  ;;  %v1684_v62 = vmax.f32 %v1165_v56, %v1549_v57  ;;  %v400_v63 = vpop.f32.mrf.mxu0  ;;  %v784_v0 = vpop.f32.mrf.mxu1 }
 0x177   :  { %v1635_v6 = vmax.f32 %v400_v63, %v784_v0 }
 0x178   :  { %1938 = vst.msk [vmem:[%s3314_s6 + $0x68] sm:$0xf] %vm1911_vm3, %v1887_v60  ;;  %v1734_v3 = vmax.f32 %v1634_v61, %v1684_v62 }
 0x179   :  { %2108 = vmatmul.msk.bf16.gmra.mxu0 %vm238_vm2, %v2513_v58  ;;  %2233 = vmatmul.msk.bf16.gmra.mxu1 %vm238_vm2, %v2538_v59 }
 0x17a   :  { %v1788_v4 = vadd.f32 %v2795_v53, %v1734_v3  ;;  %2358 = vmatmul.msk.bf16.gmra.mxu2 %vm238_vm2, %v2563_v1  ;;  %2483 = vmatmul.msk.bf16.gmra.mxu3 %vm238_vm2, %v2588_v2 }
 0x17c   :  { %v1838_v5 = vmax.f32 %v1788_v4, 0.0 }
 0x17d   :  { %v1168_v7 = vpop.f32.mrf.mxu2  ;;  %v1552_v8 = vpop.f32.mrf.mxu3 }
 0x17e   :  { %v1888_v9 = vpack.c.bf16 %v1838_v5, %v1838_v5  ;;  %v1685_v10 = vmax.f32 %v1168_v7, %v1552_v8  ;;  %v402_v11 = vpop.f32.mrf.mxu0  ;;  %v786_v12 = vpop.f32.mrf.mxu1 }
 0x17f   :  { %v1636_v21 = vmax.f32 %v402_v11, %v786_v12 }
 0x180   :  { %1939 = vst.msk [vmem:[%s3314_s6 + $0x6c] sm:$0xf] %vm1911_vm3, %v1888_v9  ;;  %v1735_v13 = vmax.f32 %v1635_v6, %v1685_v10 }
 0x182   :  { %v1789_v14 = vadd.f32 %v2795_v53, %v1735_v13 }
 0x184   :  { %v1839_v15 = vmax.f32 %v1789_v14, 0.0 }
 0x185   :  { %v1170_v16 = vpop.f32.mrf.mxu2  ;;  %v1554_v17 = vpop.f32.mrf.mxu3 }
 0x186   :  { %v1889_v20 = vpack.c.bf16 %v1839_v15, %v1839_v15  ;;  %v1686_v22 = vmax.f32 %v1170_v16, %v1554_v17  ;;  %v405_v23 = vpop.f32.mrf.mxu0  ;;  %v789_v24 = vpop.f32.mrf.mxu1 }
 0x187   :  { %v1637_v30 = vmax.f32 %v405_v23, %v789_v24 }
 0x188   :  { %1940 = vst.msk [vmem:[%s3314_s6 + $0x70] sm:$0xf] %vm1911_vm3, %v1889_v20  ;;  %v1736_v27 = vmax.f32 %v1636_v21, %v1686_v22 }
 0x189   :  { %2109 = vmatmul.msk.bf16.gmra.mxu0 %vm238_vm2, %v2514_v18  ;;  %2234 = vmatmul.msk.bf16.gmra.mxu1 %vm238_vm2, %v2539_v19 }
 0x18a   :  { %v1790_v28 = vadd.f32 %v2795_v53, %v1736_v27  ;;  %2359 = vmatmul.msk.bf16.gmra.mxu2 %vm238_vm2, %v2564_v25  ;;  %2484 = vmatmul.msk.bf16.gmra.mxu3 %vm238_vm2, %v2589_v26 }
 0x18c   :  { %v1840_v29 = vmax.f32 %v1790_v28, 0.0 }
 0x18d   :  { %v1173_v31 = vpop.f32.mrf.mxu2  ;;  %v1557_v32 = vpop.f32.mrf.mxu3 }
 0x18e   :  { %v1890_v33 = vpack.c.bf16 %v1840_v29, %v1840_v29  ;;  %v1687_v34 = vmax.f32 %v1173_v31, %v1557_v32  ;;  %v407_v35 = vpop.f32.mrf.mxu0  ;;  %v791_v36 = vpop.f32.mrf.mxu1  ;;  %v3231_v29 = vld [vmem:[%s3313_s5] ss:$0 sm:$0xff] }
 0x18f   :  { %v1638_v45 = vmax.f32 %v407_v35, %v791_v36 }
 0x190   :  { %1941 = vst.msk [vmem:[%s3314_s6 + $0x74] sm:$0xf] %vm1911_vm3, %v1890_v33  ;;  %v1737_v37 = vmax.f32 %v1637_v30, %v1687_v34 }
 0x192   :  { %v1791_v38 = vadd.f32 %v2795_v53, %v1737_v37 }
 0x194   :  { %v1841_v39 = vmax.f32 %v1791_v38, 0.0 }
 0x195   :  { %v1175_v40 = vpop.f32.mrf.mxu2  ;;  %v1559_v41 = vpop.f32.mrf.mxu3 }
 0x196   :  { %v1891_v44 = vpack.c.bf16 %v1841_v39, %v1841_v39  ;;  %v1688_v46 = vmax.f32 %v1175_v40, %v1559_v41  ;;  %v410_v47 = vpop.f32.mrf.mxu0  ;;  %v794_v48 = vpop.f32.mrf.mxu1 }
 0x197   :  { %v1639_v55 = vmax.f32 %v410_v47, %v794_v48 }
 0x198   :  { %1942 = vst.msk [vmem:[%s3314_s6 + $0x78] sm:$0xf] %vm1911_vm3, %v1891_v44  ;;  %v1738_v51 = vmax.f32 %v1638_v45, %v1688_v46 }
 0x199   :  { %2110 = vmatmul.msk.bf16.gmra.mxu0 %vm238_vm2, %v2515_v42  ;;  %2235 = vmatmul.msk.bf16.gmra.mxu1 %vm238_vm2, %v2540_v43 }
 0x19a   :  { %v1792_v52 = vadd.f32 %v2795_v53, %v1738_v51  ;;  %2360 = vmatmul.msk.bf16.gmra.mxu2 %vm238_vm2, %v2565_v49  ;;  %2485 = vmatmul.msk.bf16.gmra.mxu3 %vm238_vm2, %v2590_v50 }
 0x19c   :  { %v1842_v54 = vmax.f32 %v1792_v52, 0.0 }
 0x19d   :  { %v1178_v56 = vpop.f32.mrf.mxu2  ;;  %v1562_v57 = vpop.f32.mrf.mxu3 }
 0x19e   :  { %v1892_v58 = vpack.c.bf16 %v1842_v54, %v1842_v54  ;;  %v1689_v59 = vmax.f32 %v1178_v56, %v1562_v57  ;;  %v412_v60 = vpop.f32.mrf.mxu0  ;;  %v796_v61 = vpop.f32.mrf.mxu1 }
 0x19f   :  { %v1640_v4 = vmax.f32 %v412_v60, %v796_v61 }
 0x1a0   :  { %1943 = vst.msk [vmem:[%s3314_s6 + $0x7c] sm:$0xf] %vm1911_vm3, %v1892_v58  ;;  %v1739_v62 = vmax.f32 %v1639_v55, %v1689_v59 }
 0x1a2   :  { %v1793_v63 = vadd.f32 %v2795_v53, %v1739_v62 }
 0x1a4   :  { %v1843_v0 = vmax.f32 %v1793_v63, 0.0 }
 0x1a5   :  { %v1180_v1 = vpop.f32.mrf.mxu2  ;;  %v1564_v2 = vpop.f32.mrf.mxu3 }
 0x1a6   :  { %v1893_v3 = vpack.c.bf16 %v1843_v0, %v1843_v0  ;;  %v1690_v5 = vmax.f32 %v1180_v1, %v1564_v2  ;;  %v415_v6 = vpop.f32.mrf.mxu0  ;;  %v799_v7 = vpop.f32.mrf.mxu1 }
 0x1a7   :  { %v1641_v11 = vmax.f32 %v415_v6, %v799_v7 }
 0x1a8   :  { %1944 = vst.msk [vmem:[%s3314_s6 + $0x80] sm:$0xf] %vm1911_vm3, %v1893_v3  ;;  %v1740_v8 = vmax.f32 %v1640_v4, %v1690_v5 }
 0x1aa   :  { %v1794_v9 = vadd.f32 %v2795_v53, %v1740_v8 }
 0x1ac   :  { %v1844_v10 = vmax.f32 %v1794_v9, 0.0 }
 0x1ad   :  { %v1183_v12 = vpop.f32.mrf.mxu2  ;;  %v1567_v13 = vpop.f32.mrf.mxu3 }
 0x1ae   :  { %v1894_v14 = vpack.c.bf16 %v1844_v10, %v1844_v10  ;;  %v1691_v15 = vmax.f32 %v1183_v12, %v1567_v13  ;;  %v417_v16 = vpop.f32.mrf.mxu0  ;;  %v801_v17 = vpop.f32.mrf.mxu1 }
 0x1af   :  { %v1642_v24 = vmax.f32 %v417_v16, %v801_v17 }
 0x1b0   :  { %1945 = vst.msk [vmem:[%s3314_s6 + $0x84] sm:$0xf] %vm1911_vm3, %v1894_v14  ;;  %v1741_v18 = vmax.f32 %v1641_v11, %v1691_v15 }
 0x1b2   :  { %v1795_v19 = vadd.f32 %v2795_v53, %v1741_v18 }
 0x1b4   :  { %v1845_v20 = vmax.f32 %v1795_v19, 0.0 }
 0x1b5   :  { %v1185_v21 = vpop.f32.mrf.mxu2  ;;  %v1569_v22 = vpop.f32.mrf.mxu3 }
 0x1b6   :  { %v1895_v23 = vpack.c.bf16 %v1845_v20, %v1845_v20  ;;  %v1692_v25 = vmax.f32 %v1185_v21, %v1569_v22  ;;  %v420_v26 = vpop.f32.mrf.mxu0  ;;  %v804_v27 = vpop.f32.mrf.mxu1 }
 0x1b7   :  { %v1643_v31 = vmax.f32 %v420_v26, %v804_v27 }
 0x1b8   :  { %1946 = vst.msk [vmem:[%s3314_s6 + $0x88] sm:$0xf] %vm1911_vm3, %v1895_v23  ;;  %v1742_v28 = vmax.f32 %v1642_v24, %v1692_v25 }
 0x1ba   :  { %v1796_v53 = vadd.f32 %v3231_v29, %v1742_v28 }
 0x1bc   :  { %v1846_v30 = vmax.f32 %v1796_v53, 0.0 }
 0x1bd   :  { %v1188_v32 = vpop.f32.mrf.mxu2  ;;  %v1572_v33 = vpop.f32.mrf.mxu3 }
 0x1be   :  { %v1896_v34 = vpack.c.bf16 %v1846_v30, %v1846_v30  ;;  %v1693_v35 = vmax.f32 %v1188_v32, %v1572_v33  ;;  %v422_v36 = vpop.f32.mrf.mxu0  ;;  %v806_v37 = vpop.f32.mrf.mxu1 }
 0x1bf   :  { %v1644_v44 = vmax.f32 %v422_v36, %v806_v37 }
 0x1c0   :  { %1947 = vst.msk [vmem:[%s3314_s6 + $0x8c] sm:$0xf] %vm1911_vm3, %v1896_v34  ;;  %v1743_v38 = vmax.f32 %v1643_v31, %v1693_v35 }
 0x1c2   :  { %v1797_v39 = vadd.f32 %v3231_v29, %v1743_v38 }
 0x1c4   :  { %v1847_v40 = vmax.f32 %v1797_v39, 0.0 }
 0x1c5   :  { %v1190_v41 = vpop.f32.mrf.mxu2  ;;  %v1574_v42 = vpop.f32.mrf.mxu3 }
 0x1c6   :  { %v1897_v43 = vpack.c.bf16 %v1847_v40, %v1847_v40  ;;  %v1694_v45 = vmax.f32 %v1190_v41, %v1574_v42  ;;  %v425_v46 = vpop.f32.mrf.mxu0  ;;  %v809_v47 = vpop.f32.mrf.mxu1 }
 0x1c7   :  { %v1645_v51 = vmax.f32 %v425_v46, %v809_v47 }
 0x1c8   :  { %1948 = vst.msk [vmem:[%s3314_s6 + $0x90] sm:$0xf] %vm1911_vm3, %v1897_v43  ;;  %v1744_v48 = vmax.f32 %v1644_v44, %v1694_v45 }
 0x1ca   :  { %v1798_v49 = vadd.f32 %v3231_v29, %v1744_v48 }
 0x1cc   :  { %v1848_v50 = vmax.f32 %v1798_v49, 0.0 }
 0x1cd   :  { %v1193_v52 = vpop.f32.mrf.mxu2  ;;  %v1577_v54 = vpop.f32.mrf.mxu3 }
 0x1ce   :  { %v1898_v55 = vpack.c.bf16 %v1848_v50, %v1848_v50  ;;  %v1695_v56 = vmax.f32 %v1193_v52, %v1577_v54  ;;  %v427_v57 = vpop.f32.mrf.mxu0  ;;  %v811_v58 = vpop.f32.mrf.mxu1 }
 0x1cf   :  { %v1646_v1 = vmax.f32 %v427_v57, %v811_v58 }
 0x1d0   :  { %1949 = vst.msk [vmem:[%s3314_s6 + $0x94] sm:$0xf] %vm1911_vm3, %v1898_v55  ;;  %v1745_v59 = vmax.f32 %v1645_v51, %v1695_v56 }
 0x1d2   :  { %v1799_v60 = vadd.f32 %v3231_v29, %v1745_v59 }
 0x1d4   :  { %v1849_v61 = vmax.f32 %v1799_v60, 0.0 }
 0x1d5   :  { %v1195_v62 = vpop.f32.mrf.mxu2  ;;  %v1579_v63 = vpop.f32.mrf.mxu3 }
 0x1d6   :  { %v1899_v0 = vpack.c.bf16 %v1849_v61, %v1849_v61  ;;  %v1696_v2 = vmax.f32 %v1195_v62, %v1579_v63  ;;  %v430_v3 = vpop.f32.mrf.mxu0  ;;  %v814_v4 = vpop.f32.mrf.mxu1 }
 0x1d7   :  { %v1647_v8 = vmax.f32 %v430_v3, %v814_v4 }
 0x1d8   :  { %1950 = vst.msk [vmem:[%s3314_s6 + $0x98] sm:$0xf] %vm1911_vm3, %v1899_v0  ;;  %v1746_v5 = vmax.f32 %v1646_v1, %v1696_v2 }
 0x1da   :  { %v1800_v6 = vadd.f32 %v3231_v29, %v1746_v5 }
 0x1dc   :  { %v1850_v7 = vmax.f32 %v1800_v6, 0.0 }
 0x1dd   :  { %v1198_v9 = vpop.f32.mrf.mxu2  ;;  %v1582_v10 = vpop.f32.mrf.mxu3 }
 0x1de   :  { %v1900_v11 = vpack.c.bf16 %v1850_v7, %v1850_v7  ;;  %v1697_v12 = vmax.f32 %v1198_v9, %v1582_v10  ;;  %v432_v13 = vpop.f32.mrf.mxu0  ;;  %v816_v14 = vpop.f32.mrf.mxu1 }
 0x1df   :  { %v1648_v21 = vmax.f32 %v432_v13, %v816_v14 }
 0x1e0   :  { %1951 = vst.msk [vmem:[%s3314_s6 + $0x9c] sm:$0xf] %vm1911_vm3, %v1900_v11  ;;  %v1747_v15 = vmax.f32 %v1647_v8, %v1697_v12 }
 0x1e2   :  { %v1801_v16 = vadd.f32 %v3231_v29, %v1747_v15 }
 0x1e4   :  { %v1851_v17 = vmax.f32 %v1801_v16, 0.0 }
 0x1e5   :  { %v1200_v18 = vpop.f32.mrf.mxu2  ;;  %v1584_v19 = vpop.f32.mrf.mxu3 }
 0x1e6   :  { %v1901_v20 = vpack.c.bf16 %v1851_v17, %v1851_v17  ;;  %v1698_v22 = vmax.f32 %v1200_v18, %v1584_v19  ;;  %v435_v23 = vpop.f32.mrf.mxu0  ;;  %v819_v24 = vpop.f32.mrf.mxu1 }
 0x1e7   :  { %v1649_v28 = vmax.f32 %v435_v23, %v819_v24 }
 0x1e8   :  { %1952 = vst.msk [vmem:[%s3314_s6 + $0xa0] sm:$0xf] %vm1911_vm3, %v1901_v20  ;;  %v1748_v25 = vmax.f32 %v1648_v21, %v1698_v22 }
 0x1ea   :  { %v1802_v26 = vadd.f32 %v3231_v29, %v1748_v25 }
 0x1ec   :  { %v1852_v27 = vmax.f32 %v1802_v26, 0.0 }
 0x1ed   :  { %v1203_v53 = vpop.f32.mrf.mxu2  ;;  %v1587_v30 = vpop.f32.mrf.mxu3 }
 0x1ee   :  { %v1902_v31 = vpack.c.bf16 %v1852_v27, %v1852_v27  ;;  %v1699_v32 = vmax.f32 %v1203_v53, %v1587_v30  ;;  %v437_v33 = vpop.f32.mrf.mxu0  ;;  %v821_v34 = vpop.f32.mrf.mxu1 }
 0x1ef   :  { %v1650_v41 = vmax.f32 %v437_v33, %v821_v34 }
 0x1f0   :  { %1953 = vst.msk [vmem:[%s3314_s6 + $0xa4] sm:$0xf] %vm1911_vm3, %v1902_v31  ;;  %v1749_v35 = vmax.f32 %v1649_v28, %v1699_v32 }
 0x1f2   :  { %v1803_v36 = vadd.f32 %v3231_v29, %v1749_v35 }
 0x1f4   :  { %v1853_v37 = vmax.f32 %v1803_v36, 0.0 }
 0x1f5   :  { %v1205_v38 = vpop.f32.mrf.mxu2  ;;  %v1589_v39 = vpop.f32.mrf.mxu3 }
 0x1f6   :  { %v1903_v40 = vpack.c.bf16 %v1853_v37, %v1853_v37  ;;  %v1700_v42 = vmax.f32 %v1205_v38, %v1589_v39  ;;  %v440_v43 = vpop.f32.mrf.mxu0  ;;  %v824_v44 = vpop.f32.mrf.mxu1 }
 0x1f7   :  { %v1651_v48 = vmax.f32 %v440_v43, %v824_v44 }
 0x1f8   :  { %1954 = vst.msk [vmem:[%s3314_s6 + $0xa8] sm:$0xf] %vm1911_vm3, %v1903_v40  ;;  %v1750_v45 = vmax.f32 %v1650_v41, %v1700_v42 }
 0x1fa   :  { %v1804_v46 = vadd.f32 %v3231_v29, %v1750_v45 }
 0x1fc   :  { %v1854_v47 = vmax.f32 %v1804_v46, 0.0 }
 0x1fd   :  { %v1208_v49 = vpop.f32.mrf.mxu2  ;;  %v1592_v50 = vpop.f32.mrf.mxu3 }
 0x1fe   :  { %v1904_v51 = vpack.c.bf16 %v1854_v47, %v1854_v47  ;;  %v1701_v52 = vmax.f32 %v1208_v49, %v1592_v50  ;;  %v442_v54 = vpop.f32.mrf.mxu0  ;;  %v826_v55 = vpop.f32.mrf.mxu1 }
 0x1ff   :  { %v1652_v62 = vmax.f32 %v442_v54, %v826_v55 }
 0x200   :  { %1955 = vst.msk [vmem:[%s3314_s6 + $0xac] sm:$0xf] %vm1911_vm3, %v1904_v51  ;;  %v1751_v56 = vmax.f32 %v1651_v48, %v1701_v52 }
 0x202   :  { %v1805_v57 = vadd.f32 %v3231_v29, %v1751_v56 }
 0x204   :  { %v1855_v58 = vmax.f32 %v1805_v57, 0.0 }
 0x205   :  { %v1210_v59 = vpop.f32.mrf.mxu2  ;;  %v1594_v60 = vpop.f32.mrf.mxu3 }
 0x206   :  { %v1905_v61 = vpack.c.bf16 %v1855_v58, %v1855_v58  ;;  %v1702_v63 = vmax.f32 %v1210_v59, %v1594_v60  ;;  %v445_v0 = vpop.f32.mrf.mxu0  ;;  %v829_v1 = vpop.f32.mrf.mxu1 }
 0x207   :  { %v1653_v5 = vmax.f32 %v445_v0, %v829_v1 }
 0x208   :  { %1956 = vst.msk [vmem:[%s3314_s6 + $0xb0] sm:$0xf] %vm1911_vm3, %v1905_v61  ;;  %v1752_v2 = vmax.f32 %v1652_v62, %v1702_v63 }
 0x20a   :  { %v1806_v3 = vadd.f32 %v3231_v29, %v1752_v2 }
 0x20c   :  { %v1856_v4 = vmax.f32 %v1806_v3, 0.0 }
 0x20d   :  { %v1213_v6 = vpop.f32.mrf.mxu2  ;;  %v1597_v7 = vpop.f32.mrf.mxu3 }
 0x20e   :  { %v1906_v8 = vpack.c.bf16 %v1856_v4, %v1856_v4  ;;  %v1703_v9 = vmax.f32 %v1213_v6, %v1597_v7  ;;  %v447_v10 = vpop.f32.mrf.mxu0  ;;  %v831_v11 = vpop.f32.mrf.mxu1 }
 0x20f   :  { %v1654_v18 = vmax.f32 %v447_v10, %v831_v11 }
 0x210   :  { %1957 = vst.msk [vmem:[%s3314_s6 + $0xb4] sm:$0xf] %vm1911_vm3, %v1906_v8  ;;  %v1753_v12 = vmax.f32 %v1653_v5, %v1703_v9 }
 0x212   :  { %v1807_v13 = vadd.f32 %v3231_v29, %v1753_v12 }
 0x214   :  { %v1857_v14 = vmax.f32 %v1807_v13, 0.0 }
 0x215   :  { %v1215_v15 = vpop.f32.mrf.mxu2  ;;  %v1599_v16 = vpop.f32.mrf.mxu3 }
 0x216   :  { %v1907_v17 = vpack.c.bf16 %v1857_v14, %v1857_v14  ;;  %v1704_v19 = vmax.f32 %v1215_v15, %v1599_v16  ;;  %v450_v21 = vpop.f32.mrf.mxu0  ;;  %v834_v22 = vpop.f32.mrf.mxu1 }
 0x217   :  { %v1655_v25 = vmax.f32 %v450_v21, %v834_v22 }
 0x218   :  { %1958 = vst.msk [vmem:[%s3314_s6 + $0xb8] sm:$0xf] %vm1911_vm3, %v1907_v17  ;;  %v1754_v20 = vmax.f32 %v1654_v18, %v1704_v19 }
 0x21a   :  { %v1808_v23 = vadd.f32 %v3231_v29, %v1754_v20 }
 0x21c   :  { %v1858_v24 = vmax.f32 %v1808_v23, 0.0 }
 0x21d   :  { %v1218_v26 = vpop.f32.mrf.mxu2  ;;  %v1602_v27 = vpop.f32.mrf.mxu3 }
 0x21e   :  { %v1908_v28 = vpack.c.bf16 %v1858_v24, %v1858_v24  ;;  %v1705_v53 = vmax.f32 %v1218_v26, %v1602_v27  ;;  %v452_v32 = vpop.f32.mrf.mxu0  ;;  %v836_v33 = vpop.f32.mrf.mxu1 }
 0x21f   :  { %v1656_v38 = vmax.f32 %v452_v32, %v836_v33 }
 0x220   :  { %1959 = vst.msk [vmem:[%s3314_s6 + $0xbc] sm:$0xf] %vm1911_vm3, %v1908_v28  ;;  %v1755_v30 = vmax.f32 %v1655_v25, %v1705_v53 }
 0x222   :  { %v1809_v31 = vadd.f32 %v3231_v29, %v1755_v30 }
 0x224   :  { %v1859_v34 = vmax.f32 %v1809_v31, 0.0 }
 0x225   :  { %v1220_v35 = vpop.f32.mrf.mxu2  ;;  %v1604_v36 = vpop.f32.mrf.mxu3 }
 0x226   :  { %v1909_v37 = vpack.c.bf16 %v1859_v34, %v1859_v34  ;;  %v1706_v39 = vmax.f32 %v1220_v35, %v1604_v36 }
 0x228   :  { %1960 = vst.msk [vmem:[%s3314_s6 + $0xc0] sm:$0xf] %vm1911_vm3, %v1909_v37  ;;  %v1756_v40 = vmax.f32 %v1656_v38, %v1706_v39 }
 0x22a   :  { %v1810_v41 = vadd.f32 %v3231_v29, %v1756_v40 }
 0x22c   :  { %v1860_v42 = vmax.f32 %v1810_v41, 0.0 }
 0x22e   :  { %v1910_v43 = vpack.c.bf16 %v1860_v42, %v1860_v42 }
 0x230   :  { %1961 = vst.msk [vmem:[%s3314_s6 + $0xc4] sm:$0xf] %vm1911_vm3, %v1910_v43 }

// kernel: lenet5_forward.4
= control target key start
LH: loop header
LB: loop body
LE: loop exit
PB: predicated region body
PF: predicated region fallthrough
CT: control target
= control target key end

     0   :  { %vm157_vm0 = vcmask 1042432   ;;  %vm144_vm1 = vcmask 179200   ;;  %vm613_vm2 = vcmask 125952   ;;  %s1241_s4 = inlined_call_operand.vmem [shape: bf16[150,16], index: 4, kind: input, shape index: {}]   ;;  %s1242_s1 = inlined_call_operand.vmem [shape: bf16[64,150], index: 1, kind: input, shape index: {}]   ;;  %s1243_s0 = inlined_call_operand.vmem [shape: bf16[64,150], index: 0, kind: input, shape index: {}]   ;;  %s1244_s2 = inlined_call_operand.vmem [shape: bf16[64,150], index: 2, kind: input, shape index: {}]   ;;  %s1245_s3 = inlined_call_operand.vmem [shape: bf16[64,150], index: 3, kind: input, shape index: {}]   ;;  %s1246_s5 = inlined_call_operand.vmem [shape: f32[1,16], index: 5, kind: input, shape index: {}]   ;;  %s1247_s6 = inlined_call_operand.vmem [shape: bf16[64,16], index: 6, kind: output, shape index: {}]  }
   0x1   :  { %v886_v0 = vld [vmem:[%s1241_s4 + $0x38] sm:$0xff]  ;;  %v42_v1 = vld [vmem:[%s1241_s4 + $0x48] sm:$0x7]  ;;  %v896_v2 = vld [vmem:[%s1241_s4 + $0x30] sm:$0xff] }
   0x2   :  { %161 = vmatpush.bf16.msra.mxu0 %v886_v0  ;;  %275 = vmatpush.bf16.msra.mxu2 %v886_v0  ;;  %v124_v3 = vunpack.c.l.b16 %v42_v1  ;;  %v811_v5 = vld [vmem:[%s1241_s4 + $0x28] sm:$0xff]  ;;  %v814_v7 = vld [vmem:[%s1241_s4 + $0x40] sm:$0xff]  ;;  %v809_v15 = vld [vmem:[%s1241_s4 + $0x18] sm:$0xff] }
   0x3   :  { %v823_v8 = vld [vmem:[%s1242_s1 + $0x4] sm:$0xf]  ;;  %v702_v9 = vld [vmem:[%s1242_s1 + $0x8] sm:$0xf0]  ;;  %v808_v16 = vld [vmem:[%s1241_s4 + $0x10] sm:$0xff] }
   0x4   :  { %v134_v4 = vpack.c.b16 %v124_v3, %v124_v3  ;;  %v815_v10 = vld [vmem:[%s1243_s0 + $0x4] sm:$0xf]  ;;  %v630_v11 = vld [vmem:[%s1243_s0 + $0x8] sm:$0xf0]  ;;  %v705_v13 = vor.u32 %v823_v8, %v702_v9  ;;  %v628_v19 = vld [vmem:[%s1243_s0] sm:$0xf] }
   0x5   :  { %v810_v12 = vld [vmem:[%s1241_s4 + $0x20] sm:$0xff]  ;;  %v633_v14 = vor.u32 %v815_v10, %v630_v11  ;;  %v807_v17 = vld [vmem:[%s1241_s4 + $0x8] sm:$0xff]  ;;  %v825_v20 = vld [vmem:[%s1242_s1 + $0x14] sm:$0xf] }
   0x6   :  { %162 = vmatpush.bf16.msra.mxu0 %v896_v2  ;;  %276 = vmatpush.bf16.msra.mxu2 %v896_v2  ;;  %v159_v6 = vsel %vm157_vm0, %v134_v4, 0  ;;  %v806_v18 = vld [vmem:[%s1241_s4] sm:$0xff]  ;;  %v710_v21 = vld [vmem:[%s1242_s1 + $0x18] sm:$0xf0]  ;;  %v817_v22 = vld [vmem:[%s1243_s0 + $0x14] sm:$0xf] }
   0x7   :  { %310 = vmatpush.bf16.msra.mxu3 %v159_v6  ;;  %196 = vmatpush.bf16.msra.mxu1 %v159_v6  ;;  %v638_v23 = vld [vmem:[%s1243_s0 + $0x18] sm:$0xf0]  ;;  %v816_v24 = vld [vmem:[%s1243_s0 + $0x4] sm:$0xf0]  ;;  %v700_v25 = vld [vmem:[%s1242_s1] sm:$0xf]  ;;  %v713_v27 = vor.u32 %v825_v20, %v710_v21 }
   0x8   :  { %v824_v26 = vld [vmem:[%s1242_s1 + $0x4] sm:$0xf0]  ;;  %v641_v28 = vor.u32 %v817_v22, %v638_v23  ;;  %v629_v29 = vor.u32 %v816_v24, %v628_v19  ;;  %v636_v31 = vld [vmem:[%s1243_s0 + $0x10] sm:$0xf]  ;;  %v827_v32 = vld [vmem:[%s1242_s1 + $0x24] sm:$0xf] }
   0x9   :  { %v701_v30 = vor.u32 %v824_v26, %v700_v25  ;;  %v718_v33 = vld [vmem:[%s1242_s1 + $0x28] sm:$0xf0]  ;;  %v819_v34 = vld [vmem:[%s1243_s0 + $0x24] sm:$0xf]  ;;  %v818_v36 = vld [vmem:[%s1243_s0 + $0x14] sm:$0xf0] }
   0xa   :  { %163 = vmatpush.bf16.msra.mxu0 %v811_v5  ;;  %277 = vmatpush.bf16.msra.mxu2 %v811_v5  ;;  %v646_v35 = vld [vmem:[%s1243_s0 + $0x28] sm:$0xf0]  ;;  %v708_v37 = vld [vmem:[%s1242_s1 + $0x10] sm:$0xf]  ;;  %v826_v38 = vld [vmem:[%s1242_s1 + $0x14] sm:$0xf0]  ;;  %v721_v39 = vor.u32 %v827_v32, %v718_v33  ;;  %v637_v41 = vor.u32 %v818_v36, %v636_v31 }
   0xb   :  { %311 = vmatpush.bf16.msra.mxu3 %v814_v7  ;;  %197 = vmatpush.bf16.msra.mxu1 %v814_v7  ;;  %v649_v40 = vor.u32 %v819_v34, %v646_v35  ;;  %v709_v42 = vor.u32 %v826_v38, %v708_v37  ;;  %v644_v43 = vld [vmem:[%s1243_s0 + $0x20] sm:$0xf]  ;;  %v829_v44 = vld [vmem:[%s1242_s1 + $0x34] sm:$0xf]  ;;  %v726_v45 = vld [vmem:[%s1242_s1 + $0x38] sm:$0xf0] }
   0xc   :  { %v821_v46 = vld [vmem:[%s1243_s0 + $0x34] sm:$0xf]  ;;  %v654_v47 = vld [vmem:[%s1243_s0 + $0x38] sm:$0xf0]  ;;  %v820_v48 = vld [vmem:[%s1243_s0 + $0x24] sm:$0xf0]  ;;  %v729_v51 = vor.u32 %v829_v44, %v726_v45 }
   0xd   :  { %v716_v49 = vld [vmem:[%s1242_s1 + $0x20] sm:$0xf]  ;;  %v828_v50 = vld [vmem:[%s1242_s1 + $0x24] sm:$0xf0]  ;;  %v657_v52 = vor.u32 %v821_v46, %v654_v47  ;;  %v645_v53 = vor.u32 %v820_v48, %v644_v43  ;;  %v652_v55 = vld [vmem:[%s1243_s0 + $0x30] sm:$0xf] }
   0xe   :  { %164 = vmatpush.bf16.msra.mxu0 %v810_v12  ;;  %278 = vmatpush.bf16.msra.mxu2 %v810_v12  ;;  %v717_v54 = vor.u32 %v828_v50, %v716_v49  ;;  %v831_v56 = vld [vmem:[%s1244_s2 + $0x4] sm:$0xf]  ;;  %v738_v57 = vld [vmem:[%s1244_s2 + $0x8] sm:$0xf0]  ;;  %v736_v58 = vld [vmem:[%s1244_s2] sm:$0xf] }
   0xf   :  { %424 = vmatpush.bf16.msrb.mxu3 %v159_v6  ;;  %389 = vmatpush.bf16.msrb.mxu1 %v886_v0  ;;  %v832_v59 = vld [vmem:[%s1244_s2 + $0x4] sm:$0xf0]  ;;  %v822_v60 = vld [vmem:[%s1243_s0 + $0x34] sm:$0xf0]  ;;  %v724_v61 = vld [vmem:[%s1242_s1 + $0x30] sm:$0xf]  ;;  %v741_v63 = vor.u32 %v831_v56, %v738_v57 }
  0x10   :  { %730 = vmatmul.msk.bf16.vlgmr.msra.gmra.mxu3 %vm144_vm1, %v705_v13  ;;  %694 = vmatmul.msk.bf16.vlgmr.msra.gmra.mxu1 %vm144_vm1, %v633_v14  ;;  %v830_v62 = vld [vmem:[%s1242_s1 + $0x34] sm:$0xf0]  ;;  %v653_v1 = vor.u32 %v822_v60, %v652_v55  ;;  %v772_v3 = vld [vmem:[%s1245_s3] sm:$0xf]  ;;  %v833_v4 = vld [vmem:[%s1244_s2 + $0x14] sm:$0xf] }
  0x11   :  { %v840_v8 = vld [vmem:[%s1245_s3 + $0x4] sm:$0xf0]  ;;  %v839_v9 = vld [vmem:[%s1245_s3 + $0x4] sm:$0xf]  ;;  %v774_v10 = vld [vmem:[%s1245_s3 + $0x8] sm:$0xf0] }
  0x12   :  { %165 = vmatpush.bf16.msra.mxu0 %v809_v15  ;;  %279 = vmatpush.bf16.msra.mxu2 %v809_v15  ;;  %v773_v13 = vor.u32 %v840_v8, %v772_v3  ;;  %v777_v14 = vor.u32 %v839_v9, %v774_v10  ;;  %v836_v19 = vld [vmem:[%s1244_s2 + $0x24] sm:$0xf0]  ;;  %v842_v20 = vld [vmem:[%s1245_s3 + $0x14] sm:$0xf0]  ;;  %v841_v21 = vld [vmem:[%s1245_s3 + $0x14] sm:$0xf] }
  0x13   :  { %390 = vmatpush.bf16.msrb.mxu1 %v896_v2  ;;  %425 = vmatpush.bf16.msrb.mxu3 %v814_v7  ;;  %v782_v22 = vld [vmem:[%s1245_s3 + $0x18] sm:$0xf0]  ;;  %v838_v31 = vld [vmem:[%s1244_s2 + $0x34] sm:$0xf0]  ;;  %v844_v32 = vld [vmem:[%s1245_s3 + $0x24] sm:$0xf0] }
  0x14   :  { %v785_v26 = vor.u32 %v841_v21, %v782_v22  ;;  %v843_v33 = vld [vmem:[%s1245_s3 + $0x24] sm:$0xf]  ;;  %v790_v34 = vld [vmem:[%s1245_s3 + $0x28] sm:$0xf0] }
  0x15   :  { %v793_v38 = vor.u32 %v843_v33, %v790_v34 }
  0x16   :  { %166 = vmatpush.bf16.msra.mxu0 %v808_v16  ;;  %280 = vmatpush.bf16.msra.mxu2 %v808_v16 }
  0x17   :  { %391 = vmatpush.bf16.msrb.mxu1 %v811_v5 }
  0x1a   :  { %167 = vmatpush.bf16.msra.mxu0 %v807_v17  ;;  %281 = vmatpush.bf16.msra.mxu2 %v807_v17 }
  0x1b   :  { %392 = vmatpush.bf16.msrb.mxu1 %v810_v12 }
  0x1e   :  { %168 = vmatpush.bf16.msra.mxu0 %v806_v18  ;;  %282 = vmatpush.bf16.msra.mxu2 %v806_v18 }
  0x1f   :  { %393 = vmatpush.bf16.msrb.mxu1 %v809_v15 }
  0x20   :  { %731 = vmatmul.msk.bf16.gmra.mxu3 %vm144_vm1, %v713_v27  ;;  %695 = vmatmul.msk.bf16.gmra.mxu1 %vm144_vm1, %v641_v28  ;;  %v788_v27 = vld [vmem:[%s1245_s3 + $0x20] sm:$0xf]  ;;  %v837_v28 = vld [vmem:[%s1244_s2 + $0x34] sm:$0xf] }
  0x21   :  { %169 = vmatmul.bf16.vlgmr.msra.gmra.mxu0 %v629_v29  ;;  %283 = vmatmul.bf16.vlgmr.msra.gmra.mxu2 %v701_v30  ;;  %v762_v29 = vld [vmem:[%s1244_s2 + $0x38] sm:$0xf0]  ;;  %v760_v30 = vld [vmem:[%s1244_s2 + $0x30] sm:$0xf]  ;;  %v789_v37 = vor.u32 %v844_v32, %v788_v27 }
  0x22   :  { %538 = vmatpush.bf16.msrb.mxu2 %v159_v6  ;;  %503 = vmatpush.bf16.msrb.mxu0 %v886_v0  ;;  %v737_v0 = vor.u32 %v832_v59, %v736_v58  ;;  %v744_v6 = vld [vmem:[%s1244_s2 + $0x10] sm:$0xf]  ;;  %v765_v35 = vor.u32 %v837_v28, %v762_v29  ;;  %v761_v36 = vor.u32 %v838_v31, %v760_v30 }
  0x23   :  { %394 = vmatpush.bf16.msrb.mxu1 %v808_v16 }
  0x26   :  { %504 = vmatpush.bf16.msrb.mxu0 %v896_v2  ;;  %539 = vmatpush.bf16.msrb.mxu2 %v814_v7  ;;  %v725_v2 = vor.u32 %v830_v62, %v724_v61  ;;  %v834_v7 = vld [vmem:[%s1244_s2 + $0x14] sm:$0xf0] }
  0x27   :  { %395 = vmatpush.bf16.msrb.mxu1 %v807_v17 }
  0x2a   :  { %505 = vmatpush.bf16.msrb.mxu0 %v811_v5  ;;  %v746_v5 = vld [vmem:[%s1244_s2 + $0x18] sm:$0xf0] }
  0x2b   :  { %396 = vmatpush.bf16.msrb.mxu1 %v806_v18  ;;  %v749_v11 = vor.u32 %v833_v4, %v746_v5 }
  0x2e   :  { %506 = vmatpush.bf16.msrb.mxu0 %v810_v12  ;;  %v745_v12 = vor.u32 %v834_v7, %v744_v6 }
  0x30   :  { %732 = vmatmul.msk.bf16.gmra.mxu3 %vm144_vm1, %v721_v39  ;;  %696 = vmatmul.msk.bf16.gmra.mxu1 %vm144_vm1, %v649_v40  ;;  %v796_v39 = vld [vmem:[%s1245_s3 + $0x30] sm:$0xf]  ;;  %v846_v40 = vld [vmem:[%s1245_s3 + $0x34] sm:$0xf0] }
  0x31   :  { %174 = vmatmul.bf16.gmra.mxu0 %v637_v41  ;;  %288 = vmatmul.bf16.gmra.mxu2 %v709_v42  ;;  %v845_v41 = vld [vmem:[%s1245_s3 + $0x34] sm:$0xf]  ;;  %v798_v42 = vld [vmem:[%s1245_s3 + $0x38] sm:$0xf0]  ;;  %v797_v44 = vor.u32 %v846_v40, %v796_v39 }
  0x32   :  { %507 = vmatpush.bf16.msrb.mxu0 %v809_v15  ;;  %v780_v15 = vld [vmem:[%s1245_s3 + $0x10] sm:$0xf]  ;;  %v801_v45 = vor.u32 %v845_v41, %v798_v42 }
  0x33   :  { %v781_v25 = vor.u32 %v842_v20, %v780_v15 }
  0x36   :  { %508 = vmatpush.bf16.msrb.mxu0 %v808_v16  ;;  %v835_v16 = vld [vmem:[%s1244_s2 + $0x24] sm:$0xf] }
  0x3a   :  { %509 = vmatpush.bf16.msrb.mxu0 %v807_v17  ;;  %v754_v17 = vld [vmem:[%s1244_s2 + $0x28] sm:$0xf0] }
  0x3b   :  { %v757_v23 = vor.u32 %v835_v16, %v754_v17 }
  0x3e   :  { %510 = vmatpush.bf16.msrb.mxu0 %v806_v18  ;;  %v752_v18 = vld [vmem:[%s1244_s2 + $0x20] sm:$0xf] }
  0x3f   :  { %v753_v24 = vor.u32 %v836_v19, %v752_v18 }
  0x40   :  { %733 = vmatmul.msk.bf16.gmra.mxu3 %vm144_vm1, %v729_v51  ;;  %697 = vmatmul.msk.bf16.gmra.mxu1 %vm144_vm1, %v657_v52 }
  0x41   :  { %179 = vmatmul.bf16.gmra.mxu0 %v645_v53  ;;  %293 = vmatmul.bf16.gmra.mxu2 %v717_v54 }
  0x50   :  { %766 = vmatmul.msk.bf16.vlgmr.msrb.gmra.mxu3 %vm144_vm1, %v741_v63  ;;  %397 = vmatmul.bf16.vlgmr.msrb.gmra.mxu1 %v737_v0 }
  0x51   :  { %184 = vmatmul.bf16.gmra.mxu0 %v653_v1  ;;  %298 = vmatmul.bf16.gmra.mxu2 %v725_v2 }
  0x60   :  { %767 = vmatmul.msk.bf16.gmra.mxu3 %vm144_vm1, %v749_v11  ;;  %402 = vmatmul.bf16.gmra.mxu1 %v745_v12 }
  0x61   :  { %511 = vmatmul.bf16.vlgmr.msrb.gmra.mxu0 %v773_v13  ;;  %802 = vmatmul.msk.bf16.vlgmr.msrb.gmra.mxu2 %vm144_vm1, %v777_v14 }
  0x70   :  { %768 = vmatmul.msk.bf16.gmra.mxu3 %vm144_vm1, %v757_v23  ;;  %407 = vmatmul.bf16.gmra.mxu1 %v753_v24 }
  0x71   :  { %516 = vmatmul.bf16.gmra.mxu0 %v781_v25  ;;  %803 = vmatmul.msk.bf16.gmra.mxu2 %vm144_vm1, %v785_v26 }
  0x80   :  { %769 = vmatmul.msk.bf16.gmra.mxu3 %vm144_vm1, %v765_v35  ;;  %412 = vmatmul.bf16.gmra.mxu1 %v761_v36 }
  0x81   :  { %521 = vmatmul.bf16.gmra.mxu0 %v789_v37  ;;  %804 = vmatmul.msk.bf16.gmra.mxu2 %vm144_vm1, %v793_v38 }
  0x8d   :  { %v199_v43 = vpop.f32.mrf.mxu1 }
  0x91   :  { %526 = vmatmul.bf16.gmra.mxu0 %v797_v44  ;;  %805 = vmatmul.msk.bf16.gmra.mxu2 %vm144_vm1, %v801_v45 }
  0x93   :  { %v313_v46 = vpop.f32.mrf.mxu3 }
  0x95   :  { %v201_v47 = vpop.f32.mrf.mxu1 }
  0x9b   :  { %v315_v48 = vpop.f32.mrf.mxu3 }
  0x9d   :  { %v204_v49 = vpop.f32.mrf.mxu1 }
  0x9e   :  { %v170_v50 = vpop.f32.mrf.mxu0 }
  0x9f   :  { %v1133_v51 = vadd.f32 %v199_v43, %v170_v50 }
  0xa3   :  { %v318_v52 = vpop.f32.mrf.mxu3 }
  0xa4   :  { %v284_v53 = vpop.f32.mrf.mxu2 }
  0xa5   :  { %v314_v54 = vadd.f32 %v313_v46, %v284_v53  ;;  %v206_v55 = vpop.f32.mrf.mxu1 }
  0xa6   :  { %v172_v56 = vpop.f32.mrf.mxu0 }
  0xa7   :  { %v561_v57 = vmax.f32 %v1133_v51, %v314_v54  ;;  %v1136_v58 = vadd.f32 %v201_v47, %v172_v56  ;;  %v1181_v47 = vld [vmem:[%s1246_s5] ss:$0 sm:$0xff] }
  0xab   :  { %v320_v59 = vpop.f32.mrf.mxu3 }
  0xac   :  { %v286_v60 = vpop.f32.mrf.mxu2 }
  0xad   :  { %v1138_v61 = vadd.f32 %v315_v48, %v286_v60  ;;  %v209_v62 = vpop.f32.mrf.mxu1 }
  0xae   :  { %v175_v63 = vpop.f32.mrf.mxu0 }
  0xaf   :  { %v562_v0 = vmax.f32 %v1136_v58, %v1138_v61  ;;  %v1142_v1 = vadd.f32 %v204_v49, %v175_v63 }
  0xb3   :  { %v323_v2 = vpop.f32.mrf.mxu3 }
  0xb4   :  { %v289_v3 = vpop.f32.mrf.mxu2 }
  0xb5   :  { %v1144_v4 = vadd.f32 %v318_v52, %v289_v3  ;;  %v211_v5 = vpop.f32.mrf.mxu1 }
  0xb6   :  { %v177_v6 = vpop.f32.mrf.mxu0 }
  0xb7   :  { %v563_v7 = vmax.f32 %v1142_v1, %v1144_v4  ;;  %v1148_v8 = vadd.f32 %v206_v55, %v177_v6 }
  0xbb   :  { %v325_v9 = vpop.f32.mrf.mxu3 }
  0xbc   :  { %v291_v10 = vpop.f32.mrf.mxu2 }
  0xbd   :  { %v1150_v11 = vadd.f32 %v320_v59, %v291_v10  ;;  %v214_v15 = vpop.f32.mrf.mxu1 }
  0xbe   :  { %v180_v12 = vpop.f32.mrf.mxu0 }
  0xbf   :  { %v564_v13 = vmax.f32 %v1148_v8, %v1150_v11  ;;  %v1154_v14 = vadd.f32 %v209_v62, %v180_v12 }
  0xc3   :  { %v328_v16 = vpop.f32.mrf.mxu3 }
  0xc4   :  { %v294_v17 = vpop.f32.mrf.mxu2 }
  0xc5   :  { %v1156_v18 = vadd.f32 %v323_v2, %v294_v17  ;;  %v216_v22 = vpop.f32.mrf.mxu1 }
  0xc6   :  { %v182_v19 = vpop.f32.mrf.mxu0 }
  0xc7   :  { %v565_v20 = vmax.f32 %v1154_v14, %v1156_v18  ;;  %v1160_v21 = vadd.f32 %v211_v5, %v182_v19 }
  0xcb   :  { %v330_v23 = vpop.f32.mrf.mxu3 }
  0xcc   :  { %v296_v24 = vpop.f32.mrf.mxu2 }
  0xcd   :  { %v1162_v25 = vadd.f32 %v325_v9, %v296_v24  ;;  %v398_v29 = vpop.f32.mrf.mxu1 }
  0xce   :  { %v185_v26 = vpop.f32.mrf.mxu0 }
  0xcf   :  { %v566_v27 = vmax.f32 %v1160_v21, %v1162_v25  ;;  %v1166_v28 = vadd.f32 %v214_v15, %v185_v26 }
  0xd3   :  { %v427_v31 = vpop.f32.mrf.mxu3 }
  0xd4   :  { %v299_v30 = vpop.f32.mrf.mxu2  ;;  %v428_v42 = vadd.f32 %v427_v31, %v398_v29 }
  0xd5   :  { %v1168_v32 = vadd.f32 %v328_v16, %v299_v30  ;;  %v400_v38 = vpop.f32.mrf.mxu1 }
  0xd6   :  { %v187_v33 = vpop.f32.mrf.mxu0 }
  0xd7   :  { %v567_v34 = vmax.f32 %v1166_v28, %v1168_v32  ;;  %v1172_v35 = vadd.f32 %v216_v22, %v187_v33 }
  0xdb   :  { %v429_v40 = vpop.f32.mrf.mxu3 }
  0xdc   :  { %v301_v36 = vpop.f32.mrf.mxu2  ;;  %v430_v53 = vadd.f32 %v429_v40, %v400_v38 }
  0xdd   :  { %v1174_v37 = vadd.f32 %v330_v23, %v301_v36  ;;  %v403_v48 = vpop.f32.mrf.mxu1 }
  0xde   :  { %v512_v39 = vpop.f32.mrf.mxu0 }
  0xdf   :  { %v568_v41 = vmax.f32 %v1172_v35, %v1174_v37 }
  0xe3   :  { %v432_v49 = vpop.f32.mrf.mxu3 }
  0xe4   :  { %v541_v43 = vpop.f32.mrf.mxu2  ;;  %v433_v63 = vadd.f32 %v432_v49, %v403_v48 }
  0xe5   :  { %v542_v44 = vadd.f32 %v541_v43, %v512_v39  ;;  %v405_v61 = vpop.f32.mrf.mxu1 }
  0xe6   :  { %v514_v45 = vpop.f32.mrf.mxu0 }
  0xe7   :  { %v569_v46 = vmax.f32 %v428_v42, %v542_v44 }
  0xe9   :  { %v577_v50 = vmax.f32 %v561_v57, %v569_v46 }
  0xeb   :  { %v589_v51 = vadd.f32 %v1181_v47, %v577_v50  ;;  %v434_v62 = vpop.f32.mrf.mxu3 }
  0xec   :  { %v543_v52 = vpop.f32.mrf.mxu2  ;;  %v435_v19 = vadd.f32 %v434_v62, %v405_v61 }
  0xed   :  { %v597_v54 = vmax.f32 %v589_v51, 0.0  ;;  %v544_v55 = vadd.f32 %v543_v52, %v514_v45  ;;  %v408_v15 = vpop.f32.mrf.mxu1 }
  0xee   :  { %v517_v56 = vpop.f32.mrf.mxu0 }
  0xef   :  { %v605_v58 = vpack.c.bf16 %v597_v54, %v597_v54  ;;  %v570_v59 = vmax.f32 %v430_v53, %v544_v55 }
  0xf1   :  { %614 = vst.msk [vmem:[%s1247_s6] sm:$0xf] %vm613_vm2, %v605_v58  ;;  %v578_v60 = vmax.f32 %v562_v0, %v570_v59 }
  0xf3   :  { %v590_v57 = vadd.f32 %v1181_v47, %v578_v60  ;;  %v437_v16 = vpop.f32.mrf.mxu3 }
  0xf4   :  { %v546_v2 = vpop.f32.mrf.mxu2  ;;  %v438_v4 = vadd.f32 %v437_v16, %v408_v15 }
  0xf5   :  { %v598_v3 = vmax.f32 %v590_v57, 0.0  ;;  %v547_v5 = vadd.f32 %v546_v2, %v517_v56  ;;  %v410_v36 = vpop.f32.mrf.mxu1 }
  0xf6   :  { %v519_v6 = vpop.f32.mrf.mxu0 }
  0xf7   :  { %v606_v9 = vpack.c.bf16 %v598_v3, %v598_v3  ;;  %v571_v10 = vmax.f32 %v433_v63, %v547_v5 }
  0xf9   :  { %615 = vst.msk [vmem:[%s1247_s6 + $0x4] sm:$0xf] %vm613_vm2, %v606_v9  ;;  %v579_v0 = vmax.f32 %v563_v7, %v571_v10 }
  0xfb   :  { %v591_v12 = vadd.f32 %v1181_v47, %v579_v0  ;;  %v439_v38 = vpop.f32.mrf.mxu3 }
  0xfc   :  { %v548_v17 = vpop.f32.mrf.mxu2  ;;  %v440_v43 = vadd.f32 %v439_v38, %v410_v36 }
  0xfd   :  { %v599_v22 = vmax.f32 %v591_v12, 0.0  ;;  %v549_v23 = vadd.f32 %v548_v17, %v519_v6  ;;  %v413_v49 = vpop.f32.mrf.mxu1 }
  0xfe   :  { %v522_v24 = vpop.f32.mrf.mxu0 }
  0xff   :  { %v607_v26 = vpack.c.bf16 %v599_v22, %v599_v22  ;;  %v572_v29 = vmax.f32 %v435_v19, %v549_v23 }
 0x101   :  { %616 = vst.msk [vmem:[%s1247_s6 + $0x8] sm:$0xf] %vm613_vm2, %v607_v26  ;;  %v580_v1 = vmax.f32 %v564_v13, %v572_v29 }
 0x103   :  { %v592_v7 = vadd.f32 %v1181_v47, %v580_v1  ;;  %v442_v50 = vpop.f32.mrf.mxu3 }
 0x104   :  { %v551_v30 = vpop.f32.mrf.mxu2 }
 0x105   :  { %v600_v31 = vmax.f32 %v592_v7, 0.0  ;;  %v552_v33 = vadd.f32 %v551_v30, %v522_v24  ;;  %v415_v21 = vpop.f32.mrf.mxu1 }
 0x106   :  { %v524_v42 = vpop.f32.mrf.mxu0 }
 0x107   :  { %v608_v39 = vpack.c.bf16 %v600_v31, %v600_v31  ;;  %v573_v40 = vmax.f32 %v438_v4, %v552_v33 }
 0x109   :  { %617 = vst.msk [vmem:[%s1247_s6 + $0xc] sm:$0xf] %vm613_vm2, %v608_v39  ;;  %v581_v8 = vmax.f32 %v565_v20, %v573_v40  ;;  %v443_v20 = vadd.f32 %v442_v50, %v413_v49 }
 0x10b   :  { %v593_v11 = vadd.f32 %v1181_v47, %v581_v8  ;;  %v444_v25 = vpop.f32.mrf.mxu3 }
 0x10c   :  { %v553_v13 = vpop.f32.mrf.mxu2  ;;  %v445_v61 = vadd.f32 %v444_v25, %v415_v21 }
 0x10d   :  { %v601_v44 = vmax.f32 %v593_v11, 0.0  ;;  %v554_v45 = vadd.f32 %v553_v13, %v524_v42 }
 0x10e   :  { %v527_v18 = vpop.f32.mrf.mxu0 }
 0x10f   :  { %v609_v46 = vpack.c.bf16 %v601_v44, %v601_v44  ;;  %v574_v48 = vmax.f32 %v440_v43, %v554_v45 }
 0x111   :  { %618 = vst.msk [vmem:[%s1247_s6 + $0x10] sm:$0xf] %vm613_vm2, %v609_v46  ;;  %v582_v14 = vmax.f32 %v566_v27, %v574_v48 }
 0x113   :  { %v594_v51 = vadd.f32 %v1181_v47, %v582_v14 }
 0x114   :  { %v556_v52 = vpop.f32.mrf.mxu2 }
 0x115   :  { %v602_v53 = vmax.f32 %v594_v51, 0.0  ;;  %v557_v54 = vadd.f32 %v556_v52, %v527_v18 }
 0x116   :  { %v529_v59 = vpop.f32.mrf.mxu0 }
 0x117   :  { %v610_v55 = vpack.c.bf16 %v602_v53, %v602_v53  ;;  %v575_v56 = vmax.f32 %v443_v20, %v557_v54 }
 0x119   :  { %619 = vst.msk [vmem:[%s1247_s6 + $0x14] sm:$0xf] %vm613_vm2, %v610_v55  ;;  %v583_v58 = vmax.f32 %v567_v34, %v575_v56 }
 0x11b   :  { %v595_v27 = vadd.f32 %v1181_v47, %v583_v58 }
 0x11c   :  { %v558_v60 = vpop.f32.mrf.mxu2 }
 0x11d   :  { %v603_v62 = vmax.f32 %v595_v27, 0.0  ;;  %v559_v63 = vadd.f32 %v558_v60, %v529_v59 }
 0x11f   :  { %v611_v57 = vpack.c.bf16 %v603_v62, %v603_v62  ;;  %v576_v2 = vmax.f32 %v445_v61, %v559_v63 }
 0x121   :  { %620 = vst.msk [vmem:[%s1247_s6 + $0x18] sm:$0xf] %vm613_vm2, %v611_v57  ;;  %v584_v28 = vmax.f32 %v568_v41, %v576_v2 }
 0x123   :  { %v596_v32 = vadd.f32 %v1181_v47, %v584_v28 }
 0x125   :  { %v604_v34 = vmax.f32 %v596_v32, 0.0 }
 0x127   :  { %v612_v3 = vpack.c.bf16 %v604_v34, %v604_v34 }
 0x129   :  { %621 = vst.msk [vmem:[%s1247_s6 + $0x1c] sm:$0xf] %vm613_vm2, %v612_v3 }

// kernel: lenet5_forward.5
= control target key start
LH: loop header
LB: loop body
LE: loop exit
PB: predicated region body
PF: predicated region fallthrough
CT: control target
= control target key end

     0   :  { %vm254_vm0 = vcmask 130048   ;;  %vm385_vm1 = vcmask 1043456   ;;  %vm458_vm2 = vcmask 1041408   ;;  %vm381_vm3 = vcmask 982016   ;;  %s890_s1 = inlined_call_operand.vmem [shape: bf16[400,120], index: 1, kind: input, shape index: {}]   ;;  %s891_s0 = inlined_call_operand.vmem [shape: bf16[16,400], index: 0, kind: input, shape index: {}]   ;;  %s892_s3 = inlined_call_operand.vmem [shape: bf16[120,84], index: 3, kind: input, shape index: {}]   ;;  %s893_s2 = inlined_call_operand.vmem [shape: f32[1,120], index: 2, kind: input, shape index: {}]   ;;  %s894_s4 = inlined_call_operand.vmem [shape: f32[1,84], index: 4, kind: input, shape index: {}]   ;;  %s895_s5 = inlined_call_operand.vmem [shape: bf16[84,10], index: 5, kind: input, shape index: {}]   ;;  %s896_s6 = inlined_call_operand.vmem [shape: f32[1,10], index: 6, kind: input, shape index: {}]   ;;  %s897_s7 = inlined_call_operand.vmem [shape: f32[16,10], index: 7, kind: output, shape index: {}]  }
   0x1   :  { %v661_v0 = vld [vmem:[%s890_s1 + $0x38] sm:$0xff]  ;;  %v660_v3 = vld [vmem:[%s890_s1 + $0x30] sm:$0xff]  ;;  %v659_v6 = vld [vmem:[%s890_s1 + $0x28] sm:$0xff]  ;;  %vm454_vm4 = vcmask 687104   ;;  %vm476_vm5 = vcmask 80896  }
   0x2   :  { %v669_v1 = vld [vmem:[%s890_s1 + $0x78] sm:$0xff]  ;;  %258 = vmatpush.bf16.msra.mxu0 %v661_v0  ;;  %v668_v4 = vld [vmem:[%s890_s1 + $0x70] sm:$0xff]  ;;  %v667_v7 = vld [vmem:[%s890_s1 + $0x68] sm:$0xff] }
   0x3   :  { %v677_v2 = vld [vmem:[%s890_s1 + $0xb8] sm:$0xff]  ;;  %272 = vmatpush.bf16.msra.mxu1 %v669_v1  ;;  %v676_v5 = vld [vmem:[%s890_s1 + $0xb0] sm:$0xff]  ;;  %v678_v8 = vld [vmem:[%s890_s1 + $0xc0] sm:$0xff] }
   0x4   :  { %286 = vmatpush.bf16.msra.mxu2 %v677_v2  ;;  %v675_v9 = vld [vmem:[%s890_s1 + $0xa8] sm:$0xff]  ;;  %v495_v11 = vld [vmem:[%s891_s0 + $0x18] sm:$0xf0]  ;;  %307 = vmatpush.bf16.msra.mxu3 %v678_v8  ;;  %v658_v13 = vld [vmem:[%s890_s1 + $0x20] sm:$0xff] }
   0x5   :  { %v651_v10 = vld [vmem:[%s891_s0 + $0xc] sm:$0xf]  ;;  %v666_v14 = vld [vmem:[%s890_s1 + $0x60] sm:$0xff]  ;;  %v331_v16 = vld [vmem:[%s892_s3 + $0x38] sm:$0xf] }
   0x6   :  { %259 = vmatpush.bf16.msra.mxu0 %v660_v3  ;;  %v498_v12 = vor.u32 %v651_v10, %v495_v11  ;;  %v674_v15 = vld [vmem:[%s890_s1 + $0xa0] sm:$0xff]  ;;  %v365_v17 = vunpack.c.l.b16 %v331_v16  ;;  %v657_v18 = vld [vmem:[%s890_s1 + $0x18] sm:$0xff]  ;;  %v685_v23 = vld [vmem:[%s892_s3 + $0x30] sm:$0xff] }
   0x7   :  { %273 = vmatpush.bf16.msra.mxu1 %v668_v4  ;;  %v665_v19 = vld [vmem:[%s890_s1 + $0x58] sm:$0xff]  ;;  %v656_v24 = vld [vmem:[%s890_s1 + $0x10] sm:$0xff]  ;;  %v655_v27 = vld [vmem:[%s890_s1 + $0x8] sm:$0xff] }
   0x8   :  { %287 = vmatpush.bf16.msra.mxu2 %v676_v5  ;;  %599 = vmatmul.msk.bf16.vlgmr.msra.gmra.mxu3 %vm254_vm0, %v498_v12  ;;  %v373_v20 = vpack.c.b16 %v365_v17, %v365_v17  ;;  %v673_v21 = vld [vmem:[%s890_s1 + $0x98] sm:$0xff]  ;;  %v664_v25 = vld [vmem:[%s890_s1 + $0x50] sm:$0xff]  ;;  %v663_v28 = vld [vmem:[%s890_s1 + $0x48] sm:$0xff] }
   0x9   :  { %v672_v26 = vld [vmem:[%s890_s1 + $0x90] sm:$0xff]  ;;  %v671_v29 = vld [vmem:[%s890_s1 + $0x88] sm:$0xff]  ;;  %v654_v30 = vld [vmem:[%s890_s1] sm:$0xff] }
   0xa   :  { %260 = vmatpush.bf16.msra.mxu0 %v659_v6  ;;  %v387_v22 = vsel %vm385_vm1, %v373_v20, 0  ;;  %v662_v31 = vld [vmem:[%s890_s1 + $0x40] sm:$0xff]  ;;  %v652_v33 = vld [vmem:[%s891_s0 + $0xc] sm:$0xf0]  ;;  %v487_v35 = vld [vmem:[%s891_s0 + $0x10] sm:$0xf0] }
   0xb   :  { %274 = vmatpush.bf16.msra.mxu1 %v667_v7  ;;  %389 = vmatpush.bf16.msrb.mxu3 %v387_v22  ;;  %v485_v32 = vld [vmem:[%s891_s0] sm:$0xf]  ;;  %v650_v34 = vld [vmem:[%s891_s0 + $0x4] sm:$0xf]  ;;  %v493_v37 = vld [vmem:[%s891_s0 + $0x8] sm:$0xf] }
   0xc   :  { %288 = vmatpush.bf16.msra.mxu2 %v675_v9  ;;  %v670_v36 = vld [vmem:[%s890_s1 + $0x80] sm:$0xff]  ;;  %v653_v38 = vld [vmem:[%s891_s0 + $0x14] sm:$0xf0]  ;;  %v486_v39 = vor.u32 %v652_v33, %v485_v32  ;;  %v490_v40 = vor.u32 %v650_v34, %v487_v35  ;;  %v684_v42 = vld [vmem:[%s892_s3 + $0x28] sm:$0xff] }
   0xd   :  { %v494_v41 = vor.u32 %v653_v38, %v493_v37  ;;  %v683_v43 = vld [vmem:[%s892_s3 + $0x20] sm:$0xff]  ;;  %v682_v44 = vld [vmem:[%s892_s3 + $0x18] sm:$0xff]  ;;  %v681_v45 = vld [vmem:[%s892_s3 + $0x10] sm:$0xff] }
   0xe   :  { %261 = vmatpush.bf16.msra.mxu0 %v658_v13  ;;  %v680_v46 = vld [vmem:[%s892_s3 + $0x8] sm:$0xff]  ;;  %v679_v47 = vld [vmem:[%s892_s3] sm:$0xff]  ;;  %v689_v9 = vld [vmem:[%s895_s5 + $0x18] sm:$0xff] }
   0xf   :  { %275 = vmatpush.bf16.msra.mxu1 %v666_v14  ;;  %390 = vmatpush.bf16.msrb.mxu3 %v685_v23  ;;  %v416_v48 = vld [vmem:[%s895_s5 + $0x28] sm:$0x3]  ;;  %v690_v52 = vld [vmem:[%s895_s5 + $0x20] sm:$0xff]  ;;  %v688_v10 = vld [vmem:[%s895_s5 + $0x10] sm:$0xff] }
  0x10   :  { %289 = vmatpush.bf16.msra.mxu2 %v674_v15  ;;  %v442_v49 = vunpack.c.l.b16 %v416_v48  ;;  %v691_v53 = vld [vmem:[%s893_s2] ss:$0 sm:$0xff]  ;;  %v687_v11 = vld [vmem:[%s895_s5 + $0x8] sm:$0xff] }
  0x11   :  { %v686_v12 = vld [vmem:[%s895_s5] sm:$0xff] }
  0x12   :  { %262 = vmatpush.bf16.msra.mxu0 %v657_v18  ;;  %v448_v50 = vpack.c.b16 %v442_v49, %v442_v49  ;;  %v692_v14 = vld [vmem:[%s894_s4] ss:$0 sm:$0xff] }
  0x13   :  { %276 = vmatpush.bf16.msra.mxu1 %v665_v19  ;;  %391 = vmatpush.bf16.msrb.mxu3 %v684_v42 }
  0x14   :  { %290 = vmatpush.bf16.msra.mxu2 %v673_v21  ;;  %v460_v51 = vsel %vm458_vm2, %v448_v50, 0  ;;  %v693_v21 = vld [vmem:[%s896_s6] ss:$0 sm:$0xff] }
  0x16   :  { %263 = vmatpush.bf16.msra.mxu0 %v656_v24 }
  0x17   :  { %277 = vmatpush.bf16.msra.mxu1 %v664_v25  ;;  %392 = vmatpush.bf16.msrb.mxu3 %v683_v43 }
  0x18   :  { %291 = vmatpush.bf16.msra.mxu2 %v672_v26 }
  0x1a   :  { %264 = vmatpush.bf16.msra.mxu0 %v655_v27 }
  0x1b   :  { %278 = vmatpush.bf16.msra.mxu1 %v663_v28  ;;  %393 = vmatpush.bf16.msrb.mxu3 %v682_v44 }
  0x1c   :  { %292 = vmatpush.bf16.msra.mxu2 %v671_v29 }
  0x1e   :  { %265 = vmatpush.bf16.msra.mxu0 %v654_v30 }
  0x1f   :  { %279 = vmatpush.bf16.msra.mxu1 %v662_v31  ;;  %394 = vmatpush.bf16.msrb.mxu3 %v681_v45 }
  0x20   :  { %293 = vmatpush.bf16.msra.mxu2 %v670_v36 }
  0x21   :  { %266 = vmatmul.bf16.vlgmr.msra.gmra.mxu0 %v486_v39 }
  0x22   :  { %280 = vmatmul.bf16.vlgmr.msra.gmra.mxu1 %v490_v40  ;;  %464 = vmatpush.bf16.msrb.mxu0 %v460_v51 }
  0x23   :  { %294 = vmatmul.bf16.vlgmr.msra.gmra.mxu2 %v494_v41  ;;  %395 = vmatpush.bf16.msrb.mxu3 %v680_v46 }
  0x26   :  { %465 = vmatpush.bf16.msrb.mxu0 %v690_v52 }
  0x27   :  { %396 = vmatpush.bf16.msrb.mxu3 %v679_v47 }
  0x2a   :  { %466 = vmatpush.bf16.msrb.mxu0 %v689_v9 }
  0x2e   :  { %467 = vmatpush.bf16.msrb.mxu0 %v688_v10 }
  0x32   :  { %468 = vmatpush.bf16.msrb.mxu0 %v687_v11 }
  0x36   :  { %469 = vmatpush.bf16.msrb.mxu0 %v686_v12 }
  0x8b   :  { %v309_v57 = vpop.f32.mrf.mxu3 }
  0x93   :  { %v311_v4 = vpop.f32.mrf.mxu3 }
  0x9e   :  { %v267_v54 = vpop.f32.mrf.mxu0 }
  0x9f   :  { %v281_v55 = vpop.f32.mrf.mxu1  ;;  %v268_v56 = vadd.f32 %v691_v53, %v267_v54 }
  0xa1   :  { %v282_v59 = vadd.f32 %v281_v55, %v268_v56 }
  0xa6   :  { %v295_v58 = vpop.f32.mrf.mxu2  ;;  %v269_v60 = vpop.f32.mrf.mxu0 }
  0xa7   :  { %v270_v61 = vadd.f32 %v691_v53, %v269_v60  ;;  %v296_v62 = vadd.f32 %v295_v58, %v282_v59  ;;  %v283_v63 = vpop.f32.mrf.mxu1 }
  0xa9   :  { %v284_v0 = vadd.f32 %v283_v63, %v270_v61  ;;  %v310_v2 = vadd.f32 %v309_v57, %v296_v62 }
  0xab   :  { %v314_v6 = vmax.f32 %v310_v2, 0.0 }
  0xae   :  { %v297_v1 = vpop.f32.mrf.mxu2 }
  0xaf   :  { %v298_v3 = vadd.f32 %v297_v1, %v284_v0 }
  0xb1   :  { %v312_v5 = vadd.f32 %v311_v4, %v298_v3 }
  0xb3   :  { %v315_v7 = vmax.f32 %v312_v5, 0.0 }
  0xb5   :  { %v316_v8 = vpack.c.bf16 %v315_v7, %v314_v6 }
  0xb7   :  { %628 = vmatmul.msk.bf16.vlgmr.msrb.gmra.mxu3 %vm381_vm3, %v316_v8 }
 0x13a   :  { %v398_v13 = vpop.f32.mrf.mxu3 }
 0x13b   :  { %v399_v15 = vadd.f32 %v692_v14, %v398_v13 }
 0x13d   :  { %v403_v18 = vmax.f32 %v399_v15, 0.0 }
 0x142   :  { %v400_v16 = vpop.f32.mrf.mxu3 }
 0x143   :  { %v401_v17 = vadd.f32 %v692_v14, %v400_v16 }
 0x145   :  { %v404_v19 = vmax.f32 %v401_v17, 0.0 }
 0x147   :  { %v405_v20 = vpack.c.bf16 %v404_v19, %v403_v18 }
 0x149   :  { %649 = vmatmul.msk.bf16.vlgmr.msrb.gmra.mxu0 %vm454_vm4, %v405_v20 }
 0x1c6   :  { %v471_v22 = vpop.f32.mrf.mxu0 }
 0x1c7   :  { %v472_v23 = vadd.f32 %v693_v21, %v471_v22 }
 0x1c9   :  { %477 = vst.msk [vmem:[%s897_s7] sm:$0xff] %vm476_vm5, %v472_v23 }
 0x1ce   :  { %v473_v24 = vpop.f32.mrf.mxu0 }
 0x1cf   :  { %v474_v25 = vadd.f32 %v693_v21, %v473_v24 }
 0x1d1   :  { %478 = vst.msk [vmem:[%s897_s7 + $0x8] sm:$0xff] %vm476_vm5, %v474_v25 }

</bundles_post_ra>
